<compile_context>
chip_gen: v7x
topology: tpu7x:2x2x1
jax: 0.10.0
libtpu: 0.0.40
codegen_flags: <defaults>
</compile_context>

<pallas_src>
import functools

import jax
import jax.numpy as jnp
from jax import lax
from jax.experimental import pallas as pl
from jax.experimental.pallas import tpu as pltpu


# -----------------------------------------------------------------------------
# Kernel 1: fused LeakyReLU + Conv2d(4,s2,p1) + ReLU + ConvTranspose2d(4,s2,p1)
#           + BatchNorm batch-statistics epilogue.  One grid step = one image.
# All in-kernel tensors are 2-D "flat spatial rows x channel lanes" slabs with a
# common flat row stride Wp2 = Wo + 2 (2 slack columns per image row), so every
# access is a contiguous pl.ds slice and every dot is a plain 2-D MXU matmul.
# -----------------------------------------------------------------------------
def _fused_down_up_kernel(xs_ref, wd_ref, wu_ref, cm_ref,
                          u_ref, st_ref, d_ref, *, Ho, Wo, cdt):
    Wp2 = Wo + 2                      # flat row stride of every spatial slab
    Lo = Ho * Wp2                     # flat output rows (incl. 2 garbage cols per row)
    cinner = wd_ref.shape[-1]
    co = u_ref.shape[-1]
    cm = cm_ref[...]                  # (Lo, 1) f32: 1.0 on valid cols, 0.0 on slack cols

    # d scratch = ReLU(down(x)) with a 1-pixel zero border (transposed-conv halo).
    d_ref[...] = jnp.zeros_like(d_ref)

    # ---- down path: LeakyReLU(0.2) + 4x4/s2 conv == 2x2/s1 conv over the s2d input ----
    acc = jnp.zeros((Lo, cinner), jnp.float32)
    for dr in range(2):
        for dc in range(2):
            t = xs_ref[0, pl.ds(dr * Wp2 + dc, Lo), :].astype(jnp.float32)
            t = jnp.where(t > 0, t, 0.2 * t)          # LeakyReLU kept in f32 (v5e-safe)
            acc = acc + jnp.dot(t.astype(cdt), wd_ref[dr, dc],
                                preferred_element_type=jnp.float32)
    dd = jnp.maximum(acc, 0.0) * cm                   # fused ReLU + zero the slack columns
    d_ref[pl.ds(Wp2 + 1, Lo), :] = dd.astype(d_ref.dtype)

    # ---- up path: ConvTranspose2d(4,s2,p1) as 4 output-parity 2x2 convs over d ----
    # parity -> [(d offset, conv-equivalent (flipped) weight tap index)] per axis.
    taps = ([(-1, 0), (0, 2)], [(0, 1), (1, 3)])
    s_sum = jnp.zeros((1, co), jnp.float32)
    s_sq = jnp.zeros((1, co), jnp.float32)
    for ph in range(2):
        for pw in range(2):
            accu = jnp.zeros((Lo, co), jnp.float32)
            for (a, kh) in taps[ph]:
                for (b, kw) in taps[pw]:
                    dt = d_ref[pl.ds((1 + a) * Wp2 + (1 + b), Lo), :]
                    accu = accu + jnp.dot(dt, wu_ref[kh, kw],
                                          preferred_element_type=jnp.float32)
            accu = accu * cm                           # zero the slack columns
            u_ref[0, 2 * ph + pw, :, :] = accu.astype(u_ref.dtype)
            # BatchNorm batch statistics fused into the epilogue (f32 accumulators).
            s_sum = s_sum + jnp.sum(accu, axis=0, keepdims=True)
            s_sq = s_sq + jnp.sum(accu * accu, axis=0, keepdims=True)
    st_ref[0, 0:1, :] = s_sum
    st_ref[0, 1:2, :] = s_sq


# -----------------------------------------------------------------------------
# Kernel 2: tiled, megacore-parallel BatchNorm apply (y = u * scale + shift).
# Rows are pre-folded in the wrapper so the lane width is 128 (lane-dense vst).
# -----------------------------------------------------------------------------
def _bn_apply_kernel(u_ref, sc_ref, sh_ref, y_ref):
    u = u_ref[...].astype(jnp.float32)
    y_ref[...] = u * sc_ref[...] + sh_ref[...]


# ------------------------------- wrapper glue --------------------------------
def _space_to_depth_down_input(x):
    """x: (N,H,W,ci) NHWC -> flat (N, (Ho+2)*(Wo+2), 4*ci) space-to-depth image.

    Channel groups (in order): x[2m-1,2k-1], x[2m-1,2k], x[2m,2k-1], x[2m,2k]
    (zero where out of range), so the 4x4/s2/p1 conv becomes a 2x2/s1 conv.
    """
    n, h, w, ci = x.shape
    ho, wo = h // 2, w // 2
    a_rows = jnp.pad(x[:, 1::2], ((0, 0), (1, 0), (0, 0), (0, 0)))   # x[2m-1]
    b_rows = jnp.pad(x[:, 0::2], ((0, 0), (0, 1), (0, 0), (0, 0)))   # x[2m]

    def _cols(z):
        c = jnp.pad(z[:, :, 1::2], ((0, 0), (0, 0), (1, 0), (0, 0)))  # col 2k-1
        d = jnp.pad(z[:, :, 0::2], ((0, 0), (0, 0), (0, 1), (0, 0)))  # col 2k
        return c, d

    ac, ad = _cols(a_rows)
    bc, bd = _cols(b_rows)
    xs = jnp.concatenate([ac, ad, bc, bd], axis=-1)          # (N, Ho+1, Wo+1, 4ci)
    xs = jnp.pad(xs, ((0, 0), (0, 1), (0, 1), (0, 0)))       # -> (N, Ho+2, Wo+2, 4ci)
    return xs.reshape(n, (ho + 2) * (wo + 2), 4 * ci)


def _regroup_down_weight(w_down):
    """(4,4,ci,cinner) HWIO -> (2,2,4*ci,cinner) matching the s2d channel-group order."""
    rows = []
    for dr in (0, 1):
        cols = []
        for dc in (0, 1):
            blk = jnp.concatenate([w_down[2 * dr + a, 2 * dc + c]
                                   for a in (0, 1) for c in (0, 1)], axis=0)
            cols.append(blk)
        rows.append(jnp.stack(cols, axis=0))
    return jnp.stack(rows, axis=0)


def unet_innermost_forward(x_nchw, w_down, w_up, gamma, beta, *,
                           compute_dtype=jnp.float32, bn_rows_per_tile=1024):
    """UnetSkipConnectionBlock forward (innermost=True, BatchNorm2d => use_bias=False).

    x_nchw : (N, outer_nc, H, W) f32
    w_down : (4,4,outer_nc,inner_nc)  HWIO  (torch Conv2d weight (Co,Ci,kh,kw) -> (kh,kw,Ci,Co))
    w_up   : (4,4,inner_nc,outer_nc)  HWIO conv-equivalent of torch ConvTranspose2d weight
             (torch (Ci,Co,kh,kw), spatially flipped, -> (kh,kw,Ci,Co))
    gamma, beta : (outer_nc,) BatchNorm affine params
    compute_dtype : jnp.float32 or jnp.bfloat16 (MXU feed dtype; accumulation is always f32)
    returns (N, 2*outer_nc, H, W) f32
    """
    n, ci, h, w = x_nchw.shape
    assert h % 2 == 0 and w % 2 == 0, "spatial dims must be even for stride-2 down/up"
    ho, wo = h // 2, w // 2
    wp2 = wo + 2
    lo = ho * wp2
    cinner = w_down.shape[-1]
    co = w_up.shape[-1]
    cdt = jnp.dtype(compute_dtype)

    x_nhwc = jnp.transpose(x_nchw, (0, 2, 3, 1)).astype(jnp.float32)
    xs = _space_to_depth_down_input(x_nhwc).astype(cdt)          # no inflation, ~|x| bytes
    wd2 = _regroup_down_weight(w_down.astype(jnp.float32)).astype(cdt)
    wu4 = w_up.astype(jnp.float32).astype(cdt)
    colmask = (jnp.arange(lo, dtype=jnp.int32) % wp2 < wo).astype(jnp.float32).reshape(lo, 1)

    # ---- stage 1: fused down + up + BN-stats, grid over the batch (megacore-parallel) ----
    kern1 = functools.partial(_fused_down_up_kernel, Ho=ho, Wo=wo, cdt=cdt)
    u4, stats = pl.pallas_call(
        kern1,
        out_shape=(jax.ShapeDtypeStruct((n, 4, lo, co), cdt),
                   jax.ShapeDtypeStruct((n, 2, co), jnp.float32)),
        grid_spec=pltpu.PrefetchScalarGridSpec(
            num_scalar_prefetch=0,
            grid=(n,),
            in_specs=[pl.BlockSpec((1, xs.shape[1], 4 * ci), lambda i: (i, 0, 0)),
                      pl.BlockSpec((2, 2, 4 * ci, cinner), lambda i: (0, 0, 0, 0)),
                      pl.BlockSpec((4, 4, cinner, co), lambda i: (0, 0, 0, 0)),
                      pl.BlockSpec((lo, 1), lambda i: (0, 0))],
            out_specs=[pl.BlockSpec((1, 4, lo, co), lambda i: (i, 0, 0, 0)),
                       pl.BlockSpec((1, 2, co), lambda i: (i, 0, 0))],
            scratch_shapes=[pltpu.VMEM(((ho + 3) * wp2, cinner), cdt)]),
        compiler_params=pltpu.CompilerParams(
            dimension_semantics=("parallel",),
            # raises v5e's 16 MiB scoped default; within v6e/v7x budgets (re-derive per gen).
            vmem_limit_bytes=32 * 1024 * 1024),
    )(xs, wd2, wu4, colmask)

    # ---- BN finalize (tiny (N,2,co) reduction; biased var, eps=1e-5, training stats) ----
    cnt = float(n * h * w)
    tot = jnp.sum(stats, axis=0)                     # (2, co)
    mean = tot[0] / cnt
    var = tot[1] / cnt - mean * mean
    scale = gamma.astype(jnp.float32) * lax.rsqrt(var + 1e-5)
    shift = beta.astype(jnp.float32) - mean * scale

    # ---- stage 2: tiled normalize; fold rows into lanes so lane width == 128 ----
    m2 = n * 4 * lo
    kf = max(1, 128 // max(co, 1))
    while kf > 1 and m2 % kf != 0:
        kf //= 2
    rows = m2 // kf
    u2 = u4.reshape(rows, kf * co)
    sc2 = jnp.tile(scale.reshape(1, co), (1, kf))
    sh2 = jnp.tile(shift.reshape(1, co), (1, kf))

    tm = min(bn_rows_per_tile, rows)
    rows_p = pl.cdiv(rows, tm) * tm
    if rows_p != rows:                               # no hard divisibility requirement
        u2 = jnp.pad(u2, ((0, rows_p - rows), (0, 0)))
    y2 = pl.pallas_call(
        _bn_apply_kernel,
        out_shape=jax.ShapeDtypeStruct((rows_p, kf * co), jnp.float32),
        grid_spec=pltpu.PrefetchScalarGridSpec(
            num_scalar_prefetch=0,
            grid=(rows_p // tm,),
            in_specs=[pl.BlockSpec((tm, kf * co), lambda i: (i, 0)),
                      pl.BlockSpec((1, kf * co), lambda i: (0, 0)),
                      pl.BlockSpec((1, kf * co), lambda i: (0, 0))],
            out_specs=pl.BlockSpec((tm, kf * co), lambda i: (i, 0))),
        compiler_params=pltpu.CompilerParams(
            dimension_semantics=("parallel",),
            vmem_limit_bytes=32 * 1024 * 1024),
    )(u2, sc2, sh2)
    y2 = y2[:rows]

    # ---- parity interleave -> NCHW, then skip-concat with the original input (layout only) ----
    y = y2.reshape(n, 2, 2, ho, wp2, co)[:, :, :, :, :wo, :]     # drop slack columns
    y = jnp.transpose(y, (0, 5, 3, 1, 4, 2)).reshape(n, co, h, w)
    return jnp.concatenate([y, x_nchw.astype(jnp.float32)], axis=1)


# ------------------------------- reference ----------------------------------
def _reference(x_nchw, w_down, w_up, gamma, beta):
    x = jnp.transpose(x_nchw, (0, 2, 3, 1)).astype(jnp.float32)
    dn = ("NHWC", "HWIO", "NHWC")
    lr = jnp.where(x > 0, x, 0.2 * x)
    d = lax.conv_general_dilated(lr, w_down, (2, 2), ((1, 1), (1, 1)), dimension_numbers=dn)
    u = lax.conv_general_dilated(jnp.maximum(d, 0.0), w_up, (1, 1), ((2, 2), (2, 2)),
                                 lhs_dilation=(2, 2), dimension_numbers=dn)
    mean = u.mean(axis=(0, 1, 2), keepdims=True)
    var = ((u - mean) ** 2).mean(axis=(0, 1, 2), keepdims=True)
    y = (u - mean) * lax.rsqrt(var + 1e-5) * gamma + beta
    out = jnp.concatenate([y, x], axis=-1)
    return jnp.transpose(out, (0, 3, 1, 2))


if __name__ == "__main__":
    key = jax.random.PRNGKey(0)
    k_x, k_wd, k_wu, k_g, k_b = jax.random.split(key, 5)
    N, outer_nc, inner_nc, H, W = 2, 4, 8, 16, 16

    x = jax.random.normal(k_x, (N, outer_nc, H, W), jnp.float32)
    w_down = 0.1 * jax.random.normal(k_wd, (4, 4, outer_nc, inner_nc), jnp.float32)
    w_up = 0.1 * jax.random.normal(k_wu, (4, 4, inner_nc, outer_nc), jnp.float32)
    gamma = 1.0 + 0.1 * jax.random.normal(k_g, (outer_nc,), jnp.float32)
    beta = 0.1 * jax.random.normal(k_b, (outer_nc,), jnp.float32)

    ref = _reference(x, w_down, w_up, gamma, beta)

    # f32 compute path: tight check against the pure-JAX reference.
    fwd_f32 = jax.jit(functools.partial(unet_innermost_forward, compute_dtype=jnp.float32))
    out = jax.block_until_ready(fwd_f32(x, w_down, w_up, gamma, beta))
    assert out.shape == (N, 2 * outer_nc, H, W), out.shape
    err = float(jnp.max(jnp.abs(out - ref)))
    assert jnp.allclose(out, ref, atol=2e-2, rtol=2e-2), f"f32 max abs err {err}"

    # bf16 MXU-feed path (f32 accumulation): looser check — BatchNorm rescales the
    # bf16 rounding error of the conv outputs by ~1/std, so ~1e-1 absolute is expected.
    fwd_bf16 = jax.jit(functools.partial(unet_innermost_forward, compute_dtype=jnp.bfloat16))
    out_bf = jax.block_until_ready(fwd_bf16(x, w_down, w_up, gamma, beta))
    err_bf = float(jnp.max(jnp.abs(out_bf - ref)))
    assert jnp.allclose(out_bf, ref, atol=1e-1, rtol=1e-1), f"bf16 max abs err {err_bf}"

    print("KERNEL_OK")
</pallas_src>

<mosaic_0001>
module attributes {stable_mosaic.version = 11 : i64} {
  func.func @_fused_down_up_kernel(%arg0: i32, %arg1: memref<1x100x16xf32, #tpu.memory_space<vmem>>, %arg2: memref<2x2x16x8xf32, #tpu.memory_space<vmem>>, %arg3: memref<4x4x8x4xf32, #tpu.memory_space<vmem>>, %arg4: memref<80x1xf32, #tpu.memory_space<vmem>>, %arg5: memref<1x4x80x4xf32, #tpu.memory_space<vmem>>, %arg6: memref<1x2x4xf32, #tpu.memory_space<vmem>>, %arg7: memref<110x8xf32, #tpu.memory_space<vmem>>) attributes {dimension_semantics = [#tpu.dimension_semantics<parallel>], iteration_bounds = array<i64: 2>, scalar_prefetch = 0 : i64, scratch_operands = 1 : i64, tpu.core_type = #tpu.core_type<tc>, window_params = [{transform_indices = @transform_0, window_bounds = array<i64: 1, 100, 16>}, {pipeline_mode = #tpu.pipeline_mode<synchronous>, transform_indices = @transform_1, window_bounds = array<i64: 2, 2, 16, 8>}, {pipeline_mode = #tpu.pipeline_mode<synchronous>, transform_indices = @transform_2, window_bounds = array<i64: 4, 4, 8, 4>}, {pipeline_mode = #tpu.pipeline_mode<synchronous>, transform_indices = @transform_3, window_bounds = array<i64: 80, 1>}, {transform_indices = @transform_4, window_bounds = array<i64: 1, 4, 80, 4>}, {transform_indices = @transform_5, window_bounds = array<i64: 1, 2, 4>}]} {
    %c0 = arith.constant 0 : index
    %c0_0 = arith.constant 0 : index
    %0 = vector.load %arg4[%c0, %c0_0] : memref<80x1xf32, #tpu.memory_space<vmem>>, vector<80x1xf32>
    %cst = arith.constant 0.000000e+00 : f32
    %1 = vector.broadcast %cst : f32 to vector<110x8xf32>
    %c0_1 = arith.constant 0 : index
    %c0_2 = arith.constant 0 : index
    %2 = vector.load %arg7[%c0_1, %c0_2] : memref<110x8xf32, #tpu.memory_space<vmem>>, vector<110x8xf32>
    tpu.vector_store %arg7[%c0_1, %c0_2], %1 {strides = array<i32>} : memref<110x8xf32, #tpu.memory_space<vmem>>, vector<110x8xf32>,
    %cst_3 = arith.constant 0.000000e+00 : f32
    %3 = vector.broadcast %cst_3 : f32 to vector<80x8xf32>
    %c0_4 = arith.constant 0 : index
    %c0_5 = arith.constant 0 : index
    %c0_6 = arith.constant 0 : index
    %4 = vector.load %arg1[%c0_4, %c0_5, %c0_6] : memref<1x100x16xf32, #tpu.memory_space<vmem>>, vector<1x80x16xf32>
    %5 = vector.shape_cast %4 : vector<1x80x16xf32> to vector<80x16xf32>
    %cst_7 = arith.constant 0.000000e+00 : f32
    %6 = vector.broadcast %cst_7 : f32 to vector<80x16xf32>
    %7 = arith.cmpf ogt, %5, %6 : vector<80x16xf32>
    %cst_8 = arith.constant 2.000000e-01 : f32
    %8 = vector.broadcast %cst_8 : f32 to vector<80x16xf32>
    %9 = arith.mulf %8, %5 : vector<80x16xf32>
    %10 = arith.select %7, %5, %9 : vector<80x16xi1>, vector<80x16xf32>
    %c0_9 = arith.constant 0 : index
    %c0_10 = arith.constant 0 : index
    %c0_11 = arith.constant 0 : index
    %c0_12 = arith.constant 0 : index
    %11 = vector.load %arg2[%c0_9, %c0_10, %c0_11, %c0_12] : memref<2x2x16x8xf32, #tpu.memory_space<vmem>>, vector<1x1x16x8xf32>
    %12 = vector.shape_cast %11 : vector<1x1x16x8xf32> to vector<16x8xf32>
    %cst_13 = arith.constant dense<0.000000e+00> : vector<80x8xf32>
    %13 = tpu.matmul %10, %12, %cst_13 {dimension_numbers = #tpu.dot_dimension_numbers<[1], [0], [0], [1], [0, 0, 1, 1], [], []>} : vector<80x16xf32>, vector<16x8xf32>, vector<80x8xf32> -> vector<80x8xf32>
    %14 = arith.addf %3, %13 : vector<80x8xf32>
    %c0_14 = arith.constant 0 : index
    %c1 = arith.constant 1 : index
    %c0_15 = arith.constant 0 : index
    %15 = vector.load %arg1[%c0_14, %c1, %c0_15] : memref<1x100x16xf32, #tpu.memory_space<vmem>>, vector<1x80x16xf32>
    %16 = vector.shape_cast %15 : vector<1x80x16xf32> to vector<80x16xf32>
    %cst_16 = arith.constant 0.000000e+00 : f32
    %17 = vector.broadcast %cst_16 : f32 to vector<80x16xf32>
    %18 = arith.cmpf ogt, %16, %17 : vector<80x16xf32>
    %cst_17 = arith.constant 2.000000e-01 : f32
    %19 = vector.broadcast %cst_17 : f32 to vector<80x16xf32>
    %20 = arith.mulf %19, %16 : vector<80x16xf32>
    %21 = arith.select %18, %16, %20 : vector<80x16xi1>, vector<80x16xf32>
    %c0_18 = arith.constant 0 : index
    %c1_19 = arith.constant 1 : index
    %c0_20 = arith.constant 0 : index
    %c0_21 = arith.constant 0 : index
    %22 = vector.load %arg2[%c0_18, %c1_19, %c0_20, %c0_21] : memref<2x2x16x8xf32, #tpu.memory_space<vmem>>, vector<1x1x16x8xf32>
    %23 = vector.shape_cast %22 : vector<1x1x16x8xf32> to vector<16x8xf32>
    %cst_22 = arith.constant dense<0.000000e+00> : vector<80x8xf32>
    %24 = tpu.matmul %21, %23, %cst_22 {dimension_numbers = #tpu.dot_dimension_numbers<[1], [0], [0], [1], [0, 0, 1, 1], [], []>} : vector<80x16xf32>, vector<16x8xf32>, vector<80x8xf32> -> vector<80x8xf32>
    %25 = arith.addf %14, %24 : vector<80x8xf32>
    %c0_23 = arith.constant 0 : index
    %c10 = arith.constant 10 : index
    %c0_24 = arith.constant 0 : index
    %26 = vector.load %arg1[%c0_23, %c10, %c0_24] : memref<1x100x16xf32, #tpu.memory_space<vmem>>, vector<1x80x16xf32>
    %27 = vector.shape_cast %26 : vector<1x80x16xf32> to vector<80x16xf32>
    %cst_25 = arith.constant 0.000000e+00 : f32
    %28 = vector.broadcast %cst_25 : f32 to vector<80x16xf32>
    %29 = arith.cmpf ogt, %27, %28 : vector<80x16xf32>
    %cst_26 = arith.constant 2.000000e-01 : f32
    %30 = vector.broadcast %cst_26 : f32 to vector<80x16xf32>
    %31 = arith.mulf %30, %27 : vector<80x16xf32>
    %32 = arith.select %29, %27, %31 : vector<80x16xi1>, vector<80x16xf32>
    %c1_27 = arith.constant 1 : index
    %c0_28 = arith.constant 0 : index
    %c0_29 = arith.constant 0 : index
    %c0_30 = arith.constant 0 : index
    %33 = vector.load %arg2[%c1_27, %c0_28, %c0_29, %c0_30] : memref<2x2x16x8xf32, #tpu.memory_space<vmem>>, vector<1x1x16x8xf32>
    %34 = vector.shape_cast %33 : vector<1x1x16x8xf32> to vector<16x8xf32>
    %cst_31 = arith.constant dense<0.000000e+00> : vector<80x8xf32>
    %35 = tpu.matmul %32, %34, %cst_31 {dimension_numbers = #tpu.dot_dimension_numbers<[1], [0], [0], [1], [0, 0, 1, 1], [], []>} : vector<80x16xf32>, vector<16x8xf32>, vector<80x8xf32> -> vector<80x8xf32>
    %36 = arith.addf %25, %35 : vector<80x8xf32>
    %c0_32 = arith.constant 0 : index
    %c11 = arith.constant 11 : index
    %c0_33 = arith.constant 0 : index
    %37 = vector.load %arg1[%c0_32, %c11, %c0_33] : memref<1x100x16xf32, #tpu.memory_space<vmem>>, vector<1x80x16xf32>
    %38 = vector.shape_cast %37 : vector<1x80x16xf32> to vector<80x16xf32>
    %cst_34 = arith.constant 0.000000e+00 : f32
    %39 = vector.broadcast %cst_34 : f32 to vector<80x16xf32>
    %40 = arith.cmpf ogt, %38, %39 : vector<80x16xf32>
    %cst_35 = arith.constant 2.000000e-01 : f32
    %41 = vector.broadcast %cst_35 : f32 to vector<80x16xf32>
    %42 = arith.mulf %41, %38 : vector<80x16xf32>
    %43 = arith.select %40, %38, %42 : vector<80x16xi1>, vector<80x16xf32>
    %c1_36 = arith.constant 1 : index
    %c1_37 = arith.constant 1 : index
    %c0_38 = arith.constant 0 : index
    %c0_39 = arith.constant 0 : index
    %44 = vector.load %arg2[%c1_36, %c1_37, %c0_38, %c0_39] : memref<2x2x16x8xf32, #tpu.memory_space<vmem>>, vector<1x1x16x8xf32>
    %45 = vector.shape_cast %44 : vector<1x1x16x8xf32> to vector<16x8xf32>
    %cst_40 = arith.constant dense<0.000000e+00> : vector<80x8xf32>
    %46 = tpu.matmul %43, %45, %cst_40 {dimension_numbers = #tpu.dot_dimension_numbers<[1], [0], [0], [1], [0, 0, 1, 1], [], []>} : vector<80x16xf32>, vector<16x8xf32>, vector<80x8xf32> -> vector<80x8xf32>
    %47 = arith.addf %36, %46 : vector<80x8xf32>
    %cst_41 = arith.constant 0.000000e+00 : f32
    %48 = vector.broadcast %cst_41 : f32 to vector<80x8xf32>
    %49 = arith.maximumf %47, %48 : vector<80x8xf32>
    %50 = vector.broadcast %0 : vector<80x1xf32> to vector<80x8xf32>
    %51 = arith.mulf %49, %50 : vector<80x8xf32>
    %c11_42 = arith.constant 11 : index
    %c0_43 = arith.constant 0 : index
    %52 = vector.load %arg7[%c11_42, %c0_43] : memref<110x8xf32, #tpu.memory_space<vmem>>, vector<80x8xf32>
    tpu.vector_store %arg7[%c11_42, %c0_43], %51 {strides = array<i32>} : memref<110x8xf32, #tpu.memory_space<vmem>>, vector<80x8xf32>,
    %cst_44 = arith.constant 0.000000e+00 : f32
    %53 = vector.broadcast %cst_44 : f32 to vector<1x4xf32>
    %cst_45 = arith.constant 0.000000e+00 : f32
    %54 = vector.broadcast %cst_45 : f32 to vector<1x4xf32>
    %cst_46 = arith.constant 0.000000e+00 : f32
    %55 = vector.broadcast %cst_46 : f32 to vector<80x4xf32>
    %c0_47 = arith.constant 0 : index
    %c0_48 = arith.constant 0 : index
    %56 = vector.load %arg7[%c0_47, %c0_48] : memref<110x8xf32, #tpu.memory_space<vmem>>, vector<80x8xf32>
    %c0_49 = arith.constant 0 : index
    %c0_50 = arith.constant 0 : index
    %c0_51 = arith.constant 0 : index
    %c0_52 = arith.constant 0 : index
    %57 = vector.load %arg3[%c0_49, %c0_50, %c0_51, %c0_52] : memref<4x4x8x4xf32, #tpu.memory_space<vmem>>, vector<1x1x8x4xf32>
    %58 = vector.shape_cast %57 : vector<1x1x8x4xf32> to vector<8x4xf32>
    %cst_53 = arith.constant dense<0.000000e+00> : vector<80x4xf32>
    %59 = tpu.matmul %56, %58, %cst_53 {dimension_numbers = #tpu.dot_dimension_numbers<[1], [0], [0], [1], [0, 0, 1, 1], [], []>} : vector<80x8xf32>, vector<8x4xf32>, vector<80x4xf32> -> vector<80x4xf32>
    %60 = arith.addf %55, %59 : vector<80x4xf32>
    %c1_54 = arith.constant 1 : index
    %c0_55 = arith.constant 0 : index
    %61 = vector.load %arg7[%c1_54, %c0_55] : memref<110x8xf32, #tpu.memory_space<vmem>>, vector<80x8xf32>
    %c0_56 = arith.constant 0 : index
    %c2 = arith.constant 2 : index
    %c0_57 = arith.constant 0 : index
    %c0_58 = arith.constant 0 : index
    %62 = vector.load %arg3[%c0_56, %c2, %c0_57, %c0_58] : memref<4x4x8x4xf32, #tpu.memory_space<vmem>>, vector<1x1x8x4xf32>
    %63 = vector.shape_cast %62 : vector<1x1x8x4xf32> to vector<8x4xf32>
    %cst_59 = arith.constant dense<0.000000e+00> : vector<80x4xf32>
    %64 = tpu.matmul %61, %63, %cst_59 {dimension_numbers = #tpu.dot_dimension_numbers<[1], [0], [0], [1], [0, 0, 1, 1], [], []>} : vector<80x8xf32>, vector<8x4xf32>, vector<80x4xf32> -> vector<80x4xf32>
    %65 = arith.addf %60, %64 : vector<80x4xf32>
    %c10_60 = arith.constant 10 : index
    %c0_61 = arith.constant 0 : index
    %66 = vector.load %arg7[%c10_60, %c0_61] : memref<110x8xf32, #tpu.memory_space<vmem>>, vector<80x8xf32>
    %c2_62 = arith.constant 2 : index
    %c0_63 = arith.constant 0 : index
    %c0_64 = arith.constant 0 : index
    %c0_65 = arith.constant 0 : index
    %67 = vector.load %arg3[%c2_62, %c0_63, %c0_64, %c0_65] : memref<4x4x8x4xf32, #tpu.memory_space<vmem>>, vector<1x1x8x4xf32>
    %68 = vector.shape_cast %67 : vector<1x1x8x4xf32> to vector<8x4xf32>
    %cst_66 = arith.constant dense<0.000000e+00> : vector<80x4xf32>
    %69 = tpu.matmul %66, %68, %cst_66 {dimension_numbers = #tpu.dot_dimension_numbers<[1], [0], [0], [1], [0, 0, 1, 1], [], []>} : vector<80x8xf32>, vector<8x4xf32>, vector<80x4xf32> -> vector<80x4xf32>
    %70 = arith.addf %65, %69 : vector<80x4xf32>
    %c11_67 = arith.constant 11 : index
    %c0_68 = arith.constant 0 : index
    %71 = vector.load %arg7[%c11_67, %c0_68] : memref<110x8xf32, #tpu.memory_space<vmem>>, vector<80x8xf32>
    %c2_69 = arith.constant 2 : index
    %c2_70 = arith.constant 2 : index
    %c0_71 = arith.constant 0 : index
    %c0_72 = arith.constant 0 : index
    %72 = vector.load %arg3[%c2_69, %c2_70, %c0_71, %c0_72] : memref<4x4x8x4xf32, #tpu.memory_space<vmem>>, vector<1x1x8x4xf32>
    %73 = vector.shape_cast %72 : vector<1x1x8x4xf32> to vector<8x4xf32>
    %cst_73 = arith.constant dense<0.000000e+00> : vector<80x4xf32>
    %74 = tpu.matmul %71, %73, %cst_73 {dimension_numbers = #tpu.dot_dimension_numbers<[1], [0], [0], [1], [0, 0, 1, 1], [], []>} : vector<80x8xf32>, vector<8x4xf32>, vector<80x4xf32> -> vector<80x4xf32>
    %75 = arith.addf %70, %74 : vector<80x4xf32>
    %76 = vector.broadcast %0 : vector<80x1xf32> to vector<80x4xf32>
    %77 = arith.mulf %75, %76 : vector<80x4xf32>
    %c0_74 = arith.constant 0 : index
    %c0_75 = arith.constant 0 : index
    %c0_76 = arith.constant 0 : index
    %c0_77 = arith.constant 0 : index
    %78 = vector.load %arg5[%c0_74, %c0_75, %c0_76, %c0_77] : memref<1x4x80x4xf32, #tpu.memory_space<vmem>>, vector<1x1x80x4xf32>
    %79 = vector.shape_cast %78 : vector<1x1x80x4xf32> to vector<80x4xf32>
    %80 = vector.shape_cast %77 : vector<80x4xf32> to vector<1x1x80x4xf32>
    tpu.vector_store %arg5[%c0_74, %c0_75, %c0_76, %c0_77], %80 {strides = array<i32>} : memref<1x4x80x4xf32, #tpu.memory_space<vmem>>, vector<1x1x80x4xf32>,
    %cst_78 = arith.constant dense<0.000000e+00> : vector<4xf32>
    %81 = vector.multi_reduction <add>, %77, %cst_78 [0] : vector<80x4xf32> to vector<4xf32>
    %82 = vector.shape_cast %81 : vector<4xf32> to vector<1x4xf32>
    %83 = arith.addf %53, %82 : vector<1x4xf32>
    %84 = arith.mulf %77, %77 : vector<80x4xf32>
    %cst_79 = arith.constant dense<0.000000e+00> : vector<4xf32>
    %85 = vector.multi_reduction <add>, %84, %cst_79 [0] : vector<80x4xf32> to vector<4xf32>
    %86 = vector.shape_cast %85 : vector<4xf32> to vector<1x4xf32>
    %87 = arith.addf %54, %86 : vector<1x4xf32>
    %cst_80 = arith.constant 0.000000e+00 : f32
    %88 = vector.broadcast %cst_80 : f32 to vector<80x4xf32>
    %c1_81 = arith.constant 1 : index
    %c0_82 = arith.constant 0 : index
    %89 = vector.load %arg7[%c1_81, %c0_82] : memref<110x8xf32, #tpu.memory_space<vmem>>, vector<80x8xf32>
    %c0_83 = arith.constant 0 : index
    %c1_84 = arith.constant 1 : index
    %c0_85 = arith.constant 0 : index
    %c0_86 = arith.constant 0 : index
    %90 = vector.load %arg3[%c0_83, %c1_84, %c0_85, %c0_86] : memref<4x4x8x4xf32, #tpu.memory_space<vmem>>, vector<1x1x8x4xf32>
    %91 = vector.shape_cast %90 : vector<1x1x8x4xf32> to vector<8x4xf32>
    %cst_87 = arith.constant dense<0.000000e+00> : vector<80x4xf32>
    %92 = tpu.matmul %89, %91, %cst_87 {dimension_numbers = #tpu.dot_dimension_numbers<[1], [0], [0], [1], [0, 0, 1, 1], [], []>} : vector<80x8xf32>, vector<8x4xf32>, vector<80x4xf32> -> vector<80x4xf32>
    %93 = arith.addf %88, %92 : vector<80x4xf32>
    %c2_88 = arith.constant 2 : index
    %c0_89 = arith.constant 0 : index
    %94 = vector.load %arg7[%c2_88, %c0_89] : memref<110x8xf32, #tpu.memory_space<vmem>>, vector<80x8xf32>
    %c0_90 = arith.constant 0 : index
    %c3 = arith.constant 3 : index
    %c0_91 = arith.constant 0 : index
    %c0_92 = arith.constant 0 : index
    %95 = vector.load %arg3[%c0_90, %c3, %c0_91, %c0_92] : memref<4x4x8x4xf32, #tpu.memory_space<vmem>>, vector<1x1x8x4xf32>
    %96 = vector.shape_cast %95 : vector<1x1x8x4xf32> to vector<8x4xf32>
    %cst_93 = arith.constant dense<0.000000e+00> : vector<80x4xf32>
    %97 = tpu.matmul %94, %96, %cst_93 {dimension_numbers = #tpu.dot_dimension_numbers<[1], [0], [0], [1], [0, 0, 1, 1], [], []>} : vector<80x8xf32>, vector<8x4xf32>, vector<80x4xf32> -> vector<80x4xf32>
    %98 = arith.addf %93, %97 : vector<80x4xf32>
    %c11_94 = arith.constant 11 : index
    %c0_95 = arith.constant 0 : index
    %99 = vector.load %arg7[%c11_94, %c0_95] : memref<110x8xf32, #tpu.memory_space<vmem>>, vector<80x8xf32>
    %c2_96 = arith.constant 2 : index
    %c1_97 = arith.constant 1 : index
    %c0_98 = arith.constant 0 : index
    %c0_99 = arith.constant 0 : index
    %100 = vector.load %arg3[%c2_96, %c1_97, %c0_98, %c0_99] : memref<4x4x8x4xf32, #tpu.memory_space<vmem>>, vector<1x1x8x4xf32>
    %101 = vector.shape_cast %100 : vector<1x1x8x4xf32> to vector<8x4xf32>
    %cst_100 = arith.constant dense<0.000000e+00> : vector<80x4xf32>
    %102 = tpu.matmul %99, %101, %cst_100 {dimension_numbers = #tpu.dot_dimension_numbers<[1], [0], [0], [1], [0, 0, 1, 1], [], []>} : vector<80x8xf32>, vector<8x4xf32>, vector<80x4xf32> -> vector<80x4xf32>
    %103 = arith.addf %98, %102 : vector<80x4xf32>
    %c12 = arith.constant 12 : index
    %c0_101 = arith.constant 0 : index
    %104 = vector.load %arg7[%c12, %c0_101] : memref<110x8xf32, #tpu.memory_space<vmem>>, vector<80x8xf32>
    %c2_102 = arith.constant 2 : index
    %c3_103 = arith.constant 3 : index
    %c0_104 = arith.constant 0 : index
    %c0_105 = arith.constant 0 : index
    %105 = vector.load %arg3[%c2_102, %c3_103, %c0_104, %c0_105] : memref<4x4x8x4xf32, #tpu.memory_space<vmem>>, vector<1x1x8x4xf32>
    %106 = vector.shape_cast %105 : vector<1x1x8x4xf32> to vector<8x4xf32>
    %cst_106 = arith.constant dense<0.000000e+00> : vector<80x4xf32>
    %107 = tpu.matmul %104, %106, %cst_106 {dimension_numbers = #tpu.dot_dimension_numbers<[1], [0], [0], [1], [0, 0, 1, 1], [], []>} : vector<80x8xf32>, vector<8x4xf32>, vector<80x4xf32> -> vector<80x4xf32>
    %108 = arith.addf %103, %107 : vector<80x4xf32>
    %109 = vector.broadcast %0 : vector<80x1xf32> to vector<80x4xf32>
    %110 = arith.mulf %108, %109 : vector<80x4xf32>
    %c0_107 = arith.constant 0 : index
    %c1_108 = arith.constant 1 : index
    %c0_109 = arith.constant 0 : index
    %c0_110 = arith.constant 0 : index
    %111 = vector.load %arg5[%c0_107, %c1_108, %c0_109, %c0_110] : memref<1x4x80x4xf32, #tpu.memory_space<vmem>>, vector<1x1x80x4xf32>
    %112 = vector.shape_cast %111 : vector<1x1x80x4xf32> to vector<80x4xf32>
    %113 = vector.shape_cast %110 : vector<80x4xf32> to vector<1x1x80x4xf32>
    tpu.vector_store %arg5[%c0_107, %c1_108, %c0_109, %c0_110], %113 {strides = array<i32>} : memref<1x4x80x4xf32, #tpu.memory_space<vmem>>, vector<1x1x80x4xf32>,
    %cst_111 = arith.constant dense<0.000000e+00> : vector<4xf32>
    %114 = vector.multi_reduction <add>, %110, %cst_111 [0] : vector<80x4xf32> to vector<4xf32>
    %115 = vector.shape_cast %114 : vector<4xf32> to vector<1x4xf32>
    %116 = arith.addf %83, %115 : vector<1x4xf32>
    %117 = arith.mulf %110, %110 : vector<80x4xf32>
    %cst_112 = arith.constant dense<0.000000e+00> : vector<4xf32>
    %118 = vector.multi_reduction <add>, %117, %cst_112 [0] : vector<80x4xf32> to vector<4xf32>
    %119 = vector.shape_cast %118 : vector<4xf32> to vector<1x4xf32>
    %120 = arith.addf %87, %119 : vector<1x4xf32>
    %cst_113 = arith.constant 0.000000e+00 : f32
    %121 = vector.broadcast %cst_113 : f32 to vector<80x4xf32>
    %c10_114 = arith.constant 10 : index
    %c0_115 = arith.constant 0 : index
    %122 = vector.load %arg7[%c10_114, %c0_115] : memref<110x8xf32, #tpu.memory_space<vmem>>, vector<80x8xf32>
    %c1_116 = arith.constant 1 : index
    %c0_117 = arith.constant 0 : index
    %c0_118 = arith.constant 0 : index
    %c0_119 = arith.constant 0 : index
    %123 = vector.load %arg3[%c1_116, %c0_117, %c0_118, %c0_119] : memref<4x4x8x4xf32, #tpu.memory_space<vmem>>, vector<1x1x8x4xf32>
    %124 = vector.shape_cast %123 : vector<1x1x8x4xf32> to vector<8x4xf32>
    %cst_120 = arith.constant dense<0.000000e+00> : vector<80x4xf32>
    %125 = tpu.matmul %122, %124, %cst_120 {dimension_numbers = #tpu.dot_dimension_numbers<[1], [0], [0], [1], [0, 0, 1, 1], [], []>} : vector<80x8xf32>, vector<8x4xf32>, vector<80x4xf32> -> vector<80x4xf32>
    %126 = arith.addf %121, %125 : vector<80x4xf32>
    %c11_121 = arith.constant 11 : index
    %c0_122 = arith.constant 0 : index
    %127 = vector.load %arg7[%c11_121, %c0_122] : memref<110x8xf32, #tpu.memory_space<vmem>>, vector<80x8xf32>
    %c1_123 = arith.constant 1 : index
    %c2_124 = arith.constant 2 : index
    %c0_125 = arith.constant 0 : index
    %c0_126 = arith.constant 0 : index
    %128 = vector.load %arg3[%c1_123, %c2_124, %c0_125, %c0_126] : memref<4x4x8x4xf32, #tpu.memory_space<vmem>>, vector<1x1x8x4xf32>
    %129 = vector.shape_cast %128 : vector<1x1x8x4xf32> to vector<8x4xf32>
    %cst_127 = arith.constant dense<0.000000e+00> : vector<80x4xf32>
    %130 = tpu.matmul %127, %129, %cst_127 {dimension_numbers = #tpu.dot_dimension_numbers<[1], [0], [0], [1], [0, 0, 1, 1], [], []>} : vector<80x8xf32>, vector<8x4xf32>, vector<80x4xf32> -> vector<80x4xf32>
    %131 = arith.addf %126, %130 : vector<80x4xf32>
    %c20 = arith.constant 20 : index
    %c0_128 = arith.constant 0 : index
    %132 = vector.load %arg7[%c20, %c0_128] : memref<110x8xf32, #tpu.memory_space<vmem>>, vector<80x8xf32>
    %c3_129 = arith.constant 3 : index
    %c0_130 = arith.constant 0 : index
    %c0_131 = arith.constant 0 : index
    %c0_132 = arith.constant 0 : index
    %133 = vector.load %arg3[%c3_129, %c0_130, %c0_131, %c0_132] : memref<4x4x8x4xf32, #tpu.memory_space<vmem>>, vector<1x1x8x4xf32>
    %134 = vector.shape_cast %133 : vector<1x1x8x4xf32> to vector<8x4xf32>
    %cst_133 = arith.constant dense<0.000000e+00> : vector<80x4xf32>
    %135 = tpu.matmul %132, %134, %cst_133 {dimension_numbers = #tpu.dot_dimension_numbers<[1], [0], [0], [1], [0, 0, 1, 1], [], []>} : vector<80x8xf32>, vector<8x4xf32>, vector<80x4xf32> -> vector<80x4xf32>
    %136 = arith.addf %131, %135 : vector<80x4xf32>
    %c21 = arith.constant 21 : index
    %c0_134 = arith.constant 0 : index
    %137 = vector.load %arg7[%c21, %c0_134] : memref<110x8xf32, #tpu.memory_space<vmem>>, vector<80x8xf32>
    %c3_135 = arith.constant 3 : index
    %c2_136 = arith.constant 2 : index
    %c0_137 = arith.constant 0 : index
    %c0_138 = arith.constant 0 : index
    %138 = vector.load %arg3[%c3_135, %c2_136, %c0_137, %c0_138] : memref<4x4x8x4xf32, #tpu.memory_space<vmem>>, vector<1x1x8x4xf32>
    %139 = vector.shape_cast %138 : vector<1x1x8x4xf32> to vector<8x4xf32>
    %cst_139 = arith.constant dense<0.000000e+00> : vector<80x4xf32>
    %140 = tpu.matmul %137, %139, %cst_139 {dimension_numbers = #tpu.dot_dimension_numbers<[1], [0], [0], [1], [0, 0, 1, 1], [], []>} : vector<80x8xf32>, vector<8x4xf32>, vector<80x4xf32> -> vector<80x4xf32>
    %141 = arith.addf %136, %140 : vector<80x4xf32>
    %142 = vector.broadcast %0 : vector<80x1xf32> to vector<80x4xf32>
    %143 = arith.mulf %141, %142 : vector<80x4xf32>
    %c0_140 = arith.constant 0 : index
    %c2_141 = arith.constant 2 : index
    %c0_142 = arith.constant 0 : index
    %c0_143 = arith.constant 0 : index
    %144 = vector.load %arg5[%c0_140, %c2_141, %c0_142, %c0_143] : memref<1x4x80x4xf32, #tpu.memory_space<vmem>>, vector<1x1x80x4xf32>
    %145 = vector.shape_cast %144 : vector<1x1x80x4xf32> to vector<80x4xf32>
    %146 = vector.shape_cast %143 : vector<80x4xf32> to vector<1x1x80x4xf32>
    tpu.vector_store %arg5[%c0_140, %c2_141, %c0_142, %c0_143], %146 {strides = array<i32>} : memref<1x4x80x4xf32, #tpu.memory_space<vmem>>, vector<1x1x80x4xf32>,
    %cst_144 = arith.constant dense<0.000000e+00> : vector<4xf32>
    %147 = vector.multi_reduction <add>, %143, %cst_144 [0] : vector<80x4xf32> to vector<4xf32>
    %148 = vector.shape_cast %147 : vector<4xf32> to vector<1x4xf32>
    %149 = arith.addf %116, %148 : vector<1x4xf32>
    %150 = arith.mulf %143, %143 : vector<80x4xf32>
    %cst_145 = arith.constant dense<0.000000e+00> : vector<4xf32>
    %151 = vector.multi_reduction <add>, %150, %cst_145 [0] : vector<80x4xf32> to vector<4xf32>
    %152 = vector.shape_cast %151 : vector<4xf32> to vector<1x4xf32>
    %153 = arith.addf %120, %152 : vector<1x4xf32>
    %cst_146 = arith.constant 0.000000e+00 : f32
    %154 = vector.broadcast %cst_146 : f32 to vector<80x4xf32>
    %c11_147 = arith.constant 11 : index
    %c0_148 = arith.constant 0 : index
    %155 = vector.load %arg7[%c11_147, %c0_148] : memref<110x8xf32, #tpu.memory_space<vmem>>, vector<80x8xf32>
    %c1_149 = arith.constant 1 : index
    %c1_150 = arith.constant 1 : index
    %c0_151 = arith.constant 0 : index
    %c0_152 = arith.constant 0 : index
    %156 = vector.load %arg3[%c1_149, %c1_150, %c0_151, %c0_152] : memref<4x4x8x4xf32, #tpu.memory_space<vmem>>, vector<1x1x8x4xf32>
    %157 = vector.shape_cast %156 : vector<1x1x8x4xf32> to vector<8x4xf32>
    %cst_153 = arith.constant dense<0.000000e+00> : vector<80x4xf32>
    %158 = tpu.matmul %155, %157, %cst_153 {dimension_numbers = #tpu.dot_dimension_numbers<[1], [0], [0], [1], [0, 0, 1, 1], [], []>} : vector<80x8xf32>, vector<8x4xf32>, vector<80x4xf32> -> vector<80x4xf32>
    %159 = arith.addf %154, %158 : vector<80x4xf32>
    %c12_154 = arith.constant 12 : index
    %c0_155 = arith.constant 0 : index
    %160 = vector.load %arg7[%c12_154, %c0_155] : memref<110x8xf32, #tpu.memory_space<vmem>>, vector<80x8xf32>
    %c1_156 = arith.constant 1 : index
    %c3_157 = arith.constant 3 : index
    %c0_158 = arith.constant 0 : index
    %c0_159 = arith.constant 0 : index
    %161 = vector.load %arg3[%c1_156, %c3_157, %c0_158, %c0_159] : memref<4x4x8x4xf32, #tpu.memory_space<vmem>>, vector<1x1x8x4xf32>
    %162 = vector.shape_cast %161 : vector<1x1x8x4xf32> to vector<8x4xf32>
    %cst_160 = arith.constant dense<0.000000e+00> : vector<80x4xf32>
    %163 = tpu.matmul %160, %162, %cst_160 {dimension_numbers = #tpu.dot_dimension_numbers<[1], [0], [0], [1], [0, 0, 1, 1], [], []>} : vector<80x8xf32>, vector<8x4xf32>, vector<80x4xf32> -> vector<80x4xf32>
    %164 = arith.addf %159, %163 : vector<80x4xf32>
    %c21_161 = arith.constant 21 : index
    %c0_162 = arith.constant 0 : index
    %165 = vector.load %arg7[%c21_161, %c0_162] : memref<110x8xf32, #tpu.memory_space<vmem>>, vector<80x8xf32>
    %c3_163 = arith.constant 3 : index
    %c1_164 = arith.constant 1 : index
    %c0_165 = arith.constant 0 : index
    %c0_166 = arith.constant 0 : index
    %166 = vector.load %arg3[%c3_163, %c1_164, %c0_165, %c0_166] : memref<4x4x8x4xf32, #tpu.memory_space<vmem>>, vector<1x1x8x4xf32>
    %167 = vector.shape_cast %166 : vector<1x1x8x4xf32> to vector<8x4xf32>
    %cst_167 = arith.constant dense<0.000000e+00> : vector<80x4xf32>
    %168 = tpu.matmul %165, %167, %cst_167 {dimension_numbers = #tpu.dot_dimension_numbers<[1], [0], [0], [1], [0, 0, 1, 1], [], []>} : vector<80x8xf32>, vector<8x4xf32>, vector<80x4xf32> -> vector<80x4xf32>
    %169 = arith.addf %164, %168 : vector<80x4xf32>
    %c22 = arith.constant 22 : index
    %c0_168 = arith.constant 0 : index
    %170 = vector.load %arg7[%c22, %c0_168] : memref<110x8xf32, #tpu.memory_space<vmem>>, vector<80x8xf32>
    %c3_169 = arith.constant 3 : index
    %c3_170 = arith.constant 3 : index
    %c0_171 = arith.constant 0 : index
    %c0_172 = arith.constant 0 : index
    %171 = vector.load %arg3[%c3_169, %c3_170, %c0_171, %c0_172] : memref<4x4x8x4xf32, #tpu.memory_space<vmem>>, vector<1x1x8x4xf32>
    %172 = vector.shape_cast %171 : vector<1x1x8x4xf32> to vector<8x4xf32>
    %cst_173 = arith.constant dense<0.000000e+00> : vector<80x4xf32>
    %173 = tpu.matmul %170, %172, %cst_173 {dimension_numbers = #tpu.dot_dimension_numbers<[1], [0], [0], [1], [0, 0, 1, 1], [], []>} : vector<80x8xf32>, vector<8x4xf32>, vector<80x4xf32> -> vector<80x4xf32>
    %174 = arith.addf %169, %173 : vector<80x4xf32>
    %175 = vector.broadcast %0 : vector<80x1xf32> to vector<80x4xf32>
    %176 = arith.mulf %174, %175 : vector<80x4xf32>
    %c0_174 = arith.constant 0 : index
    %c3_175 = arith.constant 3 : index
    %c0_176 = arith.constant 0 : index
    %c0_177 = arith.constant 0 : index
    %177 = vector.load %arg5[%c0_174, %c3_175, %c0_176, %c0_177] : memref<1x4x80x4xf32, #tpu.memory_space<vmem>>, vector<1x1x80x4xf32>
    %178 = vector.shape_cast %177 : vector<1x1x80x4xf32> to vector<80x4xf32>
    %179 = vector.shape_cast %176 : vector<80x4xf32> to vector<1x1x80x4xf32>
    tpu.vector_store %arg5[%c0_174, %c3_175, %c0_176, %c0_177], %179 {strides = array<i32>} : memref<1x4x80x4xf32, #tpu.memory_space<vmem>>, vector<1x1x80x4xf32>,
    %cst_178 = arith.constant dense<0.000000e+00> : vector<4xf32>
    %180 = vector.multi_reduction <add>, %176, %cst_178 [0] : vector<80x4xf32> to vector<4xf32>
    %181 = vector.shape_cast %180 : vector<4xf32> to vector<1x4xf32>
    %182 = arith.addf %149, %181 : vector<1x4xf32>
    %183 = arith.mulf %176, %176 : vector<80x4xf32>
    %cst_179 = arith.constant dense<0.000000e+00> : vector<4xf32>
    %184 = vector.multi_reduction <add>, %183, %cst_179 [0] : vector<80x4xf32> to vector<4xf32>
    %185 = vector.shape_cast %184 : vector<4xf32> to vector<1x4xf32>
    %186 = arith.addf %153, %185 : vector<1x4xf32>
    %c0_180 = arith.constant 0 : index
    %c0_181 = arith.constant 0 : index
    %c0_182 = arith.constant 0 : index
    %187 = vector.load %arg6[%c0_180, %c0_181, %c0_182] : memref<1x2x4xf32, #tpu.memory_space<vmem>>, vector<1x1x4xf32>
    %188 = vector.shape_cast %187 : vector<1x1x4xf32> to vector<1x4xf32>
    %189 = vector.shape_cast %182 : vector<1x4xf32> to vector<1x1x4xf32>
    tpu.vector_store %arg6[%c0_180, %c0_181, %c0_182], %189 {strides = array<i32>} : memref<1x2x4xf32, #tpu.memory_space<vmem>>, vector<1x1x4xf32>,
    %c0_183 = arith.constant 0 : index
    %c1_184 = arith.constant 1 : index
    %c0_185 = arith.constant 0 : index
    %190 = vector.load %arg6[%c0_183, %c1_184, %c0_185] : memref<1x2x4xf32, #tpu.memory_space<vmem>>, vector<1x1x4xf32>
    %191 = vector.shape_cast %190 : vector<1x1x4xf32> to vector<1x4xf32>
    %192 = vector.shape_cast %186 : vector<1x4xf32> to vector<1x1x4xf32>
    tpu.vector_store %arg6[%c0_183, %c1_184, %c0_185], %192 {strides = array<i32>} : memref<1x2x4xf32, #tpu.memory_space<vmem>>, vector<1x1x4xf32>,
    return
  }
  func.func @transform_0(%arg0: i32) -> (i32, i32, i32) {
    %c0_i32 = arith.constant 0 : i32
    %c0_i32_0 = arith.constant 0 : i32
    %c0_i32_1 = arith.constant 0 : i32
    return %arg0, %c0_i32, %c0_i32_0 : i32, i32, i32
  }
  func.func @transform_1(%arg0: i32) -> (i32, i32, i32, i32) {
    %c0_i32 = arith.constant 0 : i32
    %c0_i32_0 = arith.constant 0 : i32
    %c0_i32_1 = arith.constant 0 : i32
    %c0_i32_2 = arith.constant 0 : i32
    %c0_i32_3 = arith.constant 0 : i32
    return %c0_i32, %c0_i32_0, %c0_i32_1, %c0_i32_2 : i32, i32, i32, i32
  }
  func.func @transform_2(%arg0: i32) -> (i32, i32, i32, i32) {
    %c0_i32 = arith.constant 0 : i32
    %c0_i32_0 = arith.constant 0 : i32
    %c0_i32_1 = arith.constant 0 : i32
    %c0_i32_2 = arith.constant 0 : i32
    %c0_i32_3 = arith.constant 0 : i32
    return %c0_i32, %c0_i32_0, %c0_i32_1, %c0_i32_2 : i32, i32, i32, i32
  }
  func.func @transform_3(%arg0: i32) -> (i32, i32) {
    %c0_i32 = arith.constant 0 : i32
    %c0_i32_0 = arith.constant 0 : i32
    %c0_i32_1 = arith.constant 0 : i32
    return %c0_i32, %c0_i32_0 : i32, i32
  }
  func.func @transform_4(%arg0: i32) -> (i32, i32, i32, i32) {
    %c0_i32 = arith.constant 0 : i32
    %c0_i32_0 = arith.constant 0 : i32
    %c0_i32_1 = arith.constant 0 : i32
    %c0_i32_2 = arith.constant 0 : i32
    return %arg0, %c0_i32, %c0_i32_0, %c0_i32_1 : i32, i32, i32, i32
  }
  func.func @transform_5(%arg0: i32) -> (i32, i32, i32) {
    %c0_i32 = arith.constant 0 : i32
    %c0_i32_0 = arith.constant 0 : i32
    %c0_i32_1 = arith.constant 0 : i32
    return %arg0, %c0_i32, %c0_i32_0 : i32, i32, i32
  }
}

module attributes {stable_mosaic.version = 11 : i64} {
  func.func @_bn_apply_kernel(%arg0: i32, %arg1: memref<20x128xf32, #tpu.memory_space<vmem>>, %arg2: memref<1x128xf32, #tpu.memory_space<vmem>>, %arg3: memref<1x128xf32, #tpu.memory_space<vmem>>, %arg4: memref<20x128xf32, #tpu.memory_space<vmem>>) attributes {dimension_semantics = [#tpu.dimension_semantics<parallel>], iteration_bounds = array<i64: 1>, scalar_prefetch = 0 : i64, scratch_operands = 0 : i64, tpu.core_type = #tpu.core_type<tc>, window_params = [{transform_indices = @transform_0, window_bounds = array<i64: 20, 128>}, {pipeline_mode = #tpu.pipeline_mode<synchronous>, transform_indices = @transform_1, window_bounds = array<i64: 1, 128>}, {pipeline_mode = #tpu.pipeline_mode<synchronous>, transform_indices = @transform_2, window_bounds = array<i64: 1, 128>}, {transform_indices = @transform_3, window_bounds = array<i64: 20, 128>}]} {
    %c0 = arith.constant 0 : index
    %c0_0 = arith.constant 0 : index
    %0 = vector.load %arg1[%c0, %c0_0] : memref<20x128xf32, #tpu.memory_space<vmem>>, vector<20x128xf32>
    %c0_1 = arith.constant 0 : index
    %c0_2 = arith.constant 0 : index
    %1 = vector.load %arg2[%c0_1, %c0_2] : memref<1x128xf32, #tpu.memory_space<vmem>>, vector<1x128xf32>
    %2 = vector.broadcast %1 : vector<1x128xf32> to vector<20x128xf32>
    %3 = arith.mulf %0, %2 : vector<20x128xf32>
    %c0_3 = arith.constant 0 : index
    %c0_4 = arith.constant 0 : index
    %4 = vector.load %arg3[%c0_3, %c0_4] : memref<1x128xf32, #tpu.memory_space<vmem>>, vector<1x128xf32>
    %5 = vector.broadcast %4 : vector<1x128xf32> to vector<20x128xf32>
    %6 = arith.addf %3, %5 : vector<20x128xf32>
    %c0_5 = arith.constant 0 : index
    %c0_6 = arith.constant 0 : index
    %7 = vector.load %arg4[%c0_5, %c0_6] : memref<20x128xf32, #tpu.memory_space<vmem>>, vector<20x128xf32>
    tpu.vector_store %arg4[%c0_5, %c0_6], %6 {strides = array<i32>} : memref<20x128xf32, #tpu.memory_space<vmem>>, vector<20x128xf32>,
    return
  }
  func.func @transform_0(%arg0: i32) -> (i32, i32) {
    %c0_i32 = arith.constant 0 : i32
    %c0_i32_0 = arith.constant 0 : i32
    return %arg0, %c0_i32 : i32, i32
  }
  func.func @transform_1(%arg0: i32) -> (i32, i32) {
    %c0_i32 = arith.constant 0 : i32
    %c0_i32_0 = arith.constant 0 : i32
    %c0_i32_1 = arith.constant 0 : i32
    return %c0_i32, %c0_i32_0 : i32, i32
  }
  func.func @transform_2(%arg0: i32) -> (i32, i32) {
    %c0_i32 = arith.constant 0 : i32
    %c0_i32_0 = arith.constant 0 : i32
    %c0_i32_1 = arith.constant 0 : i32
    return %c0_i32, %c0_i32_0 : i32, i32
  }
  func.func @transform_3(%arg0: i32) -> (i32, i32) {
    %c0_i32 = arith.constant 0 : i32
    %c0_i32_0 = arith.constant 0 : i32
    return %arg0, %c0_i32 : i32, i32
  }
}

</mosaic_0001>

<bundles_post_ra>
// kernel: unet_innermost_forward.3
= control target key start
LH: loop header
LB: loop body
LE: loop exit
PB: predicated region body
PF: predicated region fallthrough
CT: control target
= control target key end

     0   :  { %s90_s0 = inlined_call_operand.vmem [shape: f32[20,128], index: 0, kind: input, shape index: {}]   ;;  %s91_s1 = inlined_call_operand.vmem [shape: f32[1,128], index: 1, kind: input, shape index: {}]   ;;  %s92_s2 = inlined_call_operand.vmem [shape: f32[1,128], index: 2, kind: input, shape index: {}]   ;;  %s93_s3 = inlined_call_operand.vmem [shape: f32[20,128], index: 3, kind: output, shape index: {}]  }
   0x1   :  { %v14_v0 = vld [vmem:[%s90_s0] sm:$0xff]  ;;  %v15_v4 = vld [vmem:[%s90_s0 + $0x8] sm:$0xff]  ;;  %v16_v5 = vld [vmem:[%s90_s0 + $0x10] sm:$0xf] }
   0x2   :  { %v44_v1 = vld [vmem:[%s91_s1] ss:$0 sm:$0xff] }
   0x3   :  { %v45_v2 = vld [vmem:[%s92_s2] ss:$0 sm:$0xff]  ;;  %v24_v3 = vmul.f32 %v44_v1, %v14_v0  ;;  %v25_v6 = vmul.f32 %v44_v1, %v15_v4  ;;  %v26_v7 = vmul.f32 %v44_v1, %v16_v5 }
   0x5   :  { %v34_v8 = vadd.f32 %v45_v2, %v24_v3  ;;  %v35_v9 = vadd.f32 %v45_v2, %v25_v6  ;;  %v36_v10 = vadd.f32 %v45_v2, %v26_v7 }
   0x7   :  { %37 = vst [vmem:[%s93_s3] sm:$0xff] %v34_v8  ;;  %38 = vst [vmem:[%s93_s3 + $0x8] sm:$0xff] %v35_v9 }
   0x8   :  { %39 = vst [vmem:[%s93_s3 + $0x10] sm:$0xf] %v36_v10 }

// kernel: unet_innermost_forward.2
= control target key start
LH: loop header
LB: loop body
LE: loop exit
PB: predicated region body
PF: predicated region fallthrough
CT: control target
= control target key end

     0   :  { %s5179_s18 = smov 0   ;;  %s6010_s0 = inlined_call_operand.vmem [shape: f32[2,100,16], index: 0, kind: input, shape index: {}]   ;;  %s6011_s1 = inlined_call_operand.vmem [shape: f32[2,2,16,8], index: 1, kind: input, shape index: {}]   ;;  %s6012_s2 = inlined_call_operand.vmem [shape: f32[4,4,8,4], index: 2, kind: input, shape index: {}]   ;;  %s6013_s3 = inlined_call_operand.vmem [shape: f32[80,1], index: 3, kind: input, shape index: {}]   ;;  %s6014_s4 = inlined_call_operand.vmem [shape: f32[2,4,80,4], index: 4, kind: output, shape index: {0}]   ;;  %s6015_s5 = inlined_call_operand.vmem [shape: f32[2,2,4], index: 5, kind: output, shape index: {1}]  }
   0x1 LB: > { %s4126_s19 = sadd.s32 4294967295, %s5145_s18   ;;  %p4130_p0 = scmp.ge.s32.totalorder %s5145_s18, 1  ;;  %s5145_s18 = sphi %s5179_s18, %s16_s18  }
   0x2   : > { %p190_p1 = scmp.lt.s32.totalorder %s5145_s18, 3 }
   0x4   : > { %p191_p2 = pnand %p4130_p0, %p190_p1 }
   0x5   : > { %v4134_v0 = vld [vmem:[%s6011_s1 + $0x10] sm:$0xff] (!%p191_p2)  ;;  %v4135_v1 = vld [vmem:[%s6011_s1 + $0x18] sm:$0xff] (!%p191_p2)  ;;  %p222_p3 = scmp.lt.s32.totalorder (!%p191_p2), %s4126_s19, 1  ;;  %v302_v2 = vld [vmem:[%s6011_s1] sm:$0xff] (!%p191_p2)  ;;  %v5147_v5 = vmov (!%p191_p2), 0   ;;  %vm347_vm0 = vcmask (!%p191_p2), 130048  }
   0x6   : > { %194 = sbr.rel (%p191_p2) target bundleno = 742 (0x2e6), region = 36  ;;  %v4959_v3 = vpack.c.bf16 (!%p191_p2), %v4135_v1, %v4134_v0  ;;  %v303_v4 = vld [vmem:[%s6011_s1 + $0x8] sm:$0xff] (!%p191_p2)  ;;  %5137 = vset.pattern.permute.xlu0 (!%p191_p2), %v5147_v5  ;;  %5138 = vset.pattern.permute.xlu1 (!%p191_p2), %v5147_v5  ;;  %v236_v7 = vld [vmem:[%s6013_s3] sm:$0xff] (!%p191_p2)  ;;  %v238_v8 = vld [vmem:[%s6013_s3 + $0x10] sm:$0xff] (!%p191_p2) }
   0x7   : > { %v4963_v6 = vpack.c.bf16 (!%p191_p2), %v303_v4, %v302_v2  ;;  %1046 = vperm.xlu0 (!%p191_p2), %5137, %v236_v7   ;;  %1056 = vperm.xlu1 (!%p191_p2), %5138, %v238_v8   ;;  %v237_v9 = vld [vmem:[%s6013_s3 + $0x8] sm:$0xff] (!%p191_p2)  ;;  %v239_v10 = vld [vmem:[%s6013_s3 + $0x18] sm:$0xff] (!%p191_p2)  ;;  %v4156_v11 = vld [vmem:[%s6011_s1 + $0x20] sm:$0xff] (!%p191_p2) }
   0x8   : > { %4960 = vmatprep.subr.bf16.mxu0 (!%p191_p2), %v4959_v3  ;;  %v4157_v12 = vld [vmem:[%s6011_s1 + $0x28] sm:$0xff] (!%p191_p2)  ;;  %v240_v13 = vld [vmem:[%s6013_s3 + $0x20] sm:$0xff] (!%p191_p2)  ;;  %v242_v31 = vld [vmem:[%s6013_s3 + $0x30] sm:$0xff] (!%p191_p2) }
   0x9   : > { %4962 = vmatpush3.bf16.msra.mxu0 (!%p191_p2), %v4959_v3  ;;  %v5233_v22 = vpack.c.bf16 (!%p191_p2), %v4157_v12, %v4156_v11  ;;  %v241_v23 = vld [vmem:[%s6013_s3 + $0x28] sm:$0xff] (!%p191_p2)  ;;  %v243_v34 = vld [vmem:[%s6013_s3 + $0x38] sm:$0xff] (!%p191_p2)  ;;  %v244_v39 = vld [vmem:[%s6013_s3 + $0x40] sm:$0xff] (!%p191_p2) }
   0xa   : > { %4964 = vmatprep.subr.bf16.mxu0 (!%p191_p2), %v4963_v6  ;;  %v245_v42 = vld [vmem:[%s6013_s3 + $0x48] sm:$0xff] (!%p191_p2)  ;;  %v4168_v59 = vld [vmem:[%s6011_s1 + $0x30] sm:$0xff] (!%p191_p2)  ;;  %v4169_v60 = vld [vmem:[%s6011_s1 + $0x38] sm:$0xff] (!%p191_p2) }
   0xb   : > { %1051 = vperm.xlu0 (!%p191_p2), %5137, %v237_v9   ;;  %1061 = vperm.xlu1 (!%p191_p2), %5138, %v239_v10   ;;  %v5279_v2 = vpack.c.bf16 (!%p191_p2), %v4169_v60, %v4168_v59 }
   0xd   : > { %s6017_s19 = smov (!%p222_p3, %s4126_s19), 1 }
   0xe   : > { %s5125_s7 = smul.u32 104, %s6017_s19  ;;  %s4133_s27 = sshll.u32 %s6017_s19, 1 }
   0xf   : > { %1066 = vperm.xlu0 %5137, %v240_v13   ;;  %1071 = vperm.xlu1 %5138, %v241_v23   ;;  %s5126_s23 = smul.u32 320, %s6017_s19  ;;  %s235_s30 = scalar_lea.vmem %s6015_s5, %s4133_s27 }
  0x10   : > { %s5217_s14 = scalar_lea.vmem %s6010_s0, %s5125_s7 }
  0x11   : > { %v304_v14 = vld [vmem:[%s5217_s14 + $0x1] sm:$0xff]  ;;  %v305_v15 = vld [vmem:[%s5217_s14 + $0x9] sm:$0xff]  ;;  %v306_v16 = vld [vmem:[%s5217_s14 + $0x11] sm:$0xff]  ;;  %s5781_s26 = scalar_lea.vmem %s6014_s4, %s5126_s23 }
  0x12   : > { %vm314_vm1 = vcmp.gt.f32.partialorder %v304_v14, 0.0  ;;  %v324_v17 = vmul.f32 0.2, %v304_v14  ;;  %vm315_vm2 = vcmp.gt.f32.partialorder %v305_v15, 0.0  ;;  %v325_v18 = vmul.f32 0.2, %v305_v15 }
  0x13   : > { %vm316_vm3 = vcmp.gt.f32.partialorder %v306_v16, 0.0  ;;  %v326_v19 = vmul.f32 0.2, %v306_v16  ;;  %v307_v20 = vld [vmem:[%s5217_s14 + $0x19] sm:$0xff]  ;;  %v308_v21 = vld [vmem:[%s5217_s14 + $0x21] sm:$0xff]  ;;  %v309_v27 = vld [vmem:[%s5217_s14 + $0x29] sm:$0xff]  ;;  %1076 = vperm.xlu0 %5137, %v242_v31   ;;  %1081 = vperm.xlu1 %5138, %v243_v34  }
  0x14   : > { %v334_v24 = vsel %vm314_vm1, %v304_v14, %v324_v17  ;;  %v335_v25 = vsel %vm315_vm2, %v305_v15, %v325_v18  ;;  %vm317_vm4 = vcmp.gt.f32.partialorder %v307_v20, 0.0  ;;  %v327_v26 = vmul.f32 0.2, %v307_v20  ;;  %v310_v30 = vld [vmem:[%s5217_s14 + $0x31] sm:$0xff]  ;;  %v311_v37 = vld [vmem:[%s5217_s14 + $0x39] sm:$0xff]  ;;  %v312_v38 = vld [vmem:[%s5217_s14 + $0x41] sm:$0xff] }
  0x15   : > { %4615 = vmatprep.mubr.msk.f32.mxu0 %vm347_vm0, %v334_v24  ;;  %v336_v28 = vsel %vm316_vm3, %v306_v16, %v326_v19  ;;  %vm318_vm5 = vcmp.gt.f32.partialorder %v308_v21, 0.0  ;;  %v328_v29 = vmul.f32 0.2, %v308_v21  ;;  %v329_v33 = vmul.f32 0.2, %v309_v27  ;;  %v313_v45 = vld [vmem:[%s5217_s14 + $0x49] sm:$0xff] }
  0x16   : > { %4616 = vmatmul.mubr.msk.f32.vlgmr.msra.gmra.mrb[0].mxu0 %vm347_vm0, %v335_v25  ;;  %v337_v32 = vsel %vm317_vm4, %v307_v20, %v327_v26  ;;  %vm319_vm6 = vcmp.gt.f32.partialorder %v309_v27, 0.0  ;;  %v330_v36 = vmul.f32 0.2, %v310_v30  ;;  %vm320_vm7 = vcmp.gt.f32.partialorder %v310_v30, 0.0  ;;  %v262_v46 = vld [vmem:[%s5217_s14] sm:$0xff]  ;;  %v263_v51 = vld [vmem:[%s5217_s14 + $0x8] sm:$0xff] }
  0x17   : > { %4966 = vmatpush3.bf16.msra.mxu0 %v4963_v6  ;;  %4618 = vmatprep.mubr.msk.f32.mxu0 %vm347_vm0, %v336_v28  ;;  %v338_v35 = vsel %vm318_vm5, %v308_v21, %v328_v29  ;;  %v339_v40 = vsel %vm319_vm6, %v309_v27, %v329_v33  ;;  %v331_v41 = vmul.f32 0.2, %v311_v37  ;;  %vm321_vm8 = vcmp.gt.f32.partialorder %v311_v37, 0.0  ;;  %v264_v52 = vld [vmem:[%s5217_s14 + $0x10] sm:$0xff]  ;;  %v265_v57 = vld [vmem:[%s5217_s14 + $0x18] sm:$0xff]  ;;  %v266_v58 = vld [vmem:[%s5217_s14 + $0x20] sm:$0xff] }
  0x18   : > { %4968 = vmatprep.subr.bf16.mxu0 %v5233_v22  ;;  %v340_v43 = vsel %vm320_vm7, %v310_v30, %v330_v36  ;;  %v332_v44 = vmul.f32 0.2, %v312_v38  ;;  %vm322_vm9 = vcmp.gt.f32.partialorder %v312_v38, 0.0  ;;  %1086 = vperm.xlu0 %5137, %v244_v39   ;;  %v333_v48 = vmul.f32 0.2, %v313_v45  ;;  %v267_v1 = vld [vmem:[%s5217_s14 + $0x28] sm:$0xff] }
  0x19   : > { %1091 = vperm.xlu1 %5138, %v245_v42   ;;  %v341_v47 = vsel %vm321_vm8, %v311_v37, %v331_v41  ;;  %vm323_vm10 = vcmp.gt.f32.partialorder %v313_v45, 0.0  ;;  %v282_v50 = vmul.f32 0.2, %v262_v46  ;;  %vm272_vm11 = vcmp.gt.f32.partialorder %v262_v46, 0.0  ;;  %v268_v3 = vld [vmem:[%s5217_s14 + $0x30] sm:$0xff]  ;;  %v269_v8 = vld [vmem:[%s5217_s14 + $0x38] sm:$0xff] }
  0x1a   : > { %4619 = vmatmul.mubr.msk.f32.gmra.mrb[2].mxu0 %vm347_vm0, %v337_v32  ;;  %v342_v49 = vsel %vm322_vm9, %v312_v38, %v332_v44  ;;  %v343_v53 = vsel %vm323_vm10, %v313_v45, %v333_v48  ;;  %v283_v54 = vmul.f32 0.2, %v263_v51  ;;  %vm273_vm12 = vcmp.gt.f32.partialorder %v263_v51, 0.0  ;;  %v270_v9 = vld [vmem:[%s5217_s14 + $0x40] sm:$0xff]  ;;  %v271_v14 = vld [vmem:[%s5217_s14 + $0x48] sm:$0xff]  ;;  %v639_v21 = vld [vmem:[%s5217_s14 + $0x12] sm:$0xff] }
  0x1b   : > { %4621 = vmatprep.mubr.msk.f32.mxu0 %vm347_vm0, %v338_v35  ;;  %v292_v55 = vsel %vm272_vm11, %v262_v46, %v282_v50  ;;  %v284_v56 = vmul.f32 0.2, %v264_v52  ;;  %vm274_vm13 = vcmp.gt.f32.partialorder %v264_v52, 0.0  ;;  %v285_v62 = vmul.f32 0.2, %v265_v57  ;;  %v638_v15 = vld [vmem:[%s5217_s14 + $0xa] sm:$0xff] }
  0x1c   : > { %v293_v61 = vsel %vm273_vm12, %v263_v51, %v283_v54  ;;  %vm275_vm14 = vcmp.gt.f32.partialorder %v265_v57, 0.0  ;;  %v286_v0 = vmul.f32 0.2, %v266_v58  ;;  %vm276_vm15 = vcmp.gt.f32.partialorder %v266_v58, 0.0  ;;  %v641_v27 = vld [vmem:[%s5217_s14 + $0x22] sm:$0xff]  ;;  %v642_v28 = vld [vmem:[%s5217_s14 + $0x2a] sm:$0xff] }
  0x1d   : > { %v294_v63 = vsel %vm274_vm13, %v264_v52, %v284_v56  ;;  %v295_v4 = vsel %vm275_vm14, %v265_v57, %v285_v62  ;;  %v287_v5 = vmul.f32 0.2, %v267_v1  ;;  %vm277_vm1 = vcmp.gt.f32.partialorder %v267_v1, 0.0  ;;  %v643_v33 = vld [vmem:[%s5217_s14 + $0x32] sm:$0xff]  ;;  %v644_v34 = vld [vmem:[%s5217_s14 + $0x3a] sm:$0xff]  ;;  %v645_v39 = vld [vmem:[%s5217_s14 + $0x42] sm:$0xff] }
  0x1e   : > { %4622 = vmatmul.mubr.msk.f32.gmra.mrb[4].mxu0 %vm347_vm0, %v339_v40  ;;  %v296_v6 = vsel %vm276_vm15, %v266_v58, %v286_v0  ;;  %v288_v7 = vmul.f32 0.2, %v268_v3  ;;  %vm278_vm2 = vcmp.gt.f32.partialorder %v268_v3, 0.0  ;;  %vm279_vm3 = vcmp.gt.f32.partialorder %v269_v8, 0.0  ;;  %v646_v40 = vld [vmem:[%s5217_s14 + $0x4a] sm:$0xff]  ;;  %v647_v45 = vld [vmem:[%s5217_s14 + $0x52] sm:$0xff] }
  0x1f   : > { %4624 = vmatprep.mubr.msk.f32.mxu0 %vm347_vm0, %v340_v43  ;;  %v297_v10 = vsel %vm277_vm1, %v267_v1, %v287_v5  ;;  %v289_v11 = vmul.f32 0.2, %v269_v8  ;;  %vm246_vm4 = vcmask 64512   ;;  %v290_v13 = vmul.f32 0.2, %v270_v9  ;;  %v836_v46 = vld [vmem:[%s5217_s14 + $0xb] sm:$0xff] }
  0x20   : > { %v298_v12 = vsel %vm278_vm2, %v268_v3, %v288_v7  ;;  %vm280_vm5 = vcmp.gt.f32.partialorder %v270_v9, 0.0  ;;  %v5148_v16 = vmov 0.0   ;;  %v291_v18 = vmul.f32 0.2, %v271_v14  ;;  %v837_v51 = vld [vmem:[%s5217_s14 + $0x13] sm:$0xff]  ;;  %v838_v52 = vld [vmem:[%s5217_s14 + $0x1b] sm:$0xff] }
  0x21   : > { %249 = vst.msk [vmem:[#allocation2 + $0x10] sm:$0xff] %vm246_vm4, %v5148_v16  ;;  %250 = vst.msk [vmem:[#allocation2 + $0x18] sm:$0xff] %vm246_vm4, %v5148_v16  ;;  %v299_v17 = vsel %vm279_vm3, %v269_v8, %v289_v11  ;;  %v300_v19 = vsel %vm280_vm5, %v270_v9, %v290_v13  ;;  %vm281_vm6 = vcmp.gt.f32.partialorder %v271_v14, 0.0  ;;  %v658_v20 = vmul.f32 0.2, %v638_v15  ;;  %v839_v57 = vld [vmem:[%s5217_s14 + $0x23] sm:$0xff] }
  0x22   : > { %4625 = vmatmul.mubr.msk.f32.gmra.mrb[6].mxu0 %vm347_vm0, %v341_v47  ;;  %247 = vst.msk [vmem:[#allocation2] sm:$0xff] %vm246_vm4, %v5148_v16  ;;  %248 = vst.msk [vmem:[#allocation2 + $0x8] sm:$0xff] %vm246_vm4, %v5148_v16  ;;  %vm648_vm7 = vcmp.gt.f32.partialorder %v638_v15, 0.0  ;;  %v301_v23 = vsel %vm281_vm6, %v271_v14, %v291_v18  ;;  %v659_v24 = vmul.f32 0.2, %v639_v21  ;;  %vm649_vm8 = vcmp.gt.f32.partialorder %v639_v21, 0.0 }
  0x23   : > { %4627 = vmatprep.mubr.msk.f32.mxu0 %vm347_vm0, %v342_v49  ;;  %251 = vst.msk [vmem:[#allocation2 + $0x20] sm:$0xff] %vm246_vm4, %v5148_v16  ;;  %252 = vst.msk [vmem:[#allocation2 + $0x28] sm:$0xff] %vm246_vm4, %v5148_v16  ;;  %v668_v25 = vsel %vm648_vm7, %v638_v15, %v658_v20  ;;  %v661_v30 = vmul.f32 0.2, %v641_v27  ;;  %vm651_vm10 = vcmp.gt.f32.partialorder %v641_v27, 0.0  ;;  %vm652_vm11 = vcmp.gt.f32.partialorder %v642_v28, 0.0 }
  0x24   : > { %253 = vst.msk [vmem:[#allocation2 + $0x30] sm:$0xff] %vm246_vm4, %v5148_v16  ;;  %254 = vst.msk [vmem:[#allocation2 + $0x38] sm:$0xff] %vm246_vm4, %v5148_v16  ;;  %v669_v29 = vsel %vm649_vm8, %v639_v21, %v659_v24  ;;  %v662_v32 = vmul.f32 0.2, %v642_v28  ;;  %v663_v36 = vmul.f32 0.2, %v643_v33 }
  0x25   : > { %255 = vst.msk [vmem:[#allocation2 + $0x40] sm:$0xff] %vm246_vm4, %v5148_v16  ;;  %256 = vst.msk [vmem:[#allocation2 + $0x48] sm:$0xff] %vm246_vm4, %v5148_v16  ;;  %v671_v35 = vsel %vm651_vm10, %v641_v27, %v661_v30  ;;  %vm653_vm12 = vcmp.gt.f32.partialorder %v643_v33, 0.0  ;;  %v664_v38 = vmul.f32 0.2, %v644_v34  ;;  %vm654_vm13 = vcmp.gt.f32.partialorder %v644_v34, 0.0 }
  0x26   : > { %4628 = vmatmul.mubr.msk.f32.gmra.mrb[8].mxu0 %vm347_vm0, %v343_v53  ;;  %257 = vst.msk [vmem:[#allocation2 + $0x50] sm:$0xff] %vm246_vm4, %v5148_v16  ;;  %258 = vst.msk [vmem:[#allocation2 + $0x58] sm:$0xff] %vm246_vm4, %v5148_v16  ;;  %v672_v37 = vsel %vm652_vm11, %v642_v28, %v662_v32  ;;  %v673_v41 = vsel %vm653_vm12, %v643_v33, %v663_v36  ;;  %v665_v42 = vmul.f32 0.2, %v645_v39  ;;  %vm655_vm14 = vcmp.gt.f32.partialorder %v645_v39, 0.0  ;;  %v840_v58 = vld [vmem:[%s5217_s14 + $0x2b] sm:$0xff] }
  0x27   : > { %4634 = vmatprep.mubr.msk.f32.mxu0 %vm347_vm0, %v292_v55  ;;  %259 = vst.msk [vmem:[#allocation2 + $0x60] sm:$0xff] %vm246_vm4, %v5148_v16  ;;  %v674_v43 = vsel %vm654_vm13, %v644_v34, %v664_v38  ;;  %v666_v44 = vmul.f32 0.2, %v646_v40  ;;  %vm656_vm15 = vcmp.gt.f32.partialorder %v646_v40, 0.0  ;;  %v667_v48 = vmul.f32 0.2, %v647_v45 }
  0x28   : > { %v675_v47 = vsel %vm655_vm14, %v645_v39, %v665_v42  ;;  %vm657_vm1 = vcmp.gt.f32.partialorder %v647_v45, 0.0  ;;  %v856_v50 = vmul.f32 0.2, %v836_v46  ;;  %vm846_vm2 = vcmp.gt.f32.partialorder %v836_v46, 0.0  ;;  %v842_v0 = vld [vmem:[%s5217_s14 + $0x3b] sm:$0xff]  ;;  %v843_v5 = vld [vmem:[%s5217_s14 + $0x43] sm:$0xff] }
  0x29   : > { %v676_v49 = vsel %vm656_vm15, %v646_v40, %v666_v44  ;;  %v677_v53 = vsel %vm657_vm1, %v647_v45, %v667_v48  ;;  %v857_v54 = vmul.f32 0.2, %v837_v51  ;;  %vm847_vm3 = vcmp.gt.f32.partialorder %v837_v51, 0.0  ;;  %v845_v11 = vld [vmem:[%s5217_s14 + $0x53] sm:$0xff]  ;;  %v5358_v18 = vld [vmem:[#allocation2 + $0x1] sm:$0xff] }
  0x2a   : > { %4635 = vmatmul.mubr.msk.f32.vlgmr.msra.gmra.mrb[0].mxu0 %vm347_vm0, %v293_v61  ;;  %v866_v55 = vsel %vm846_vm2, %v836_v46, %v856_v50  ;;  %v858_v56 = vmul.f32 0.2, %v838_v52  ;;  %vm848_vm5 = vcmp.gt.f32.partialorder %v838_v52, 0.0  ;;  %v859_v60 = vmul.f32 0.2, %v839_v57  ;;  %v4180_v16 = vld [vmem:[%s6012_s2 + $0x10] sm:$0xff] }
  0x2b   : > { %4970 = vmatpush3.bf16.msra.mxu0 %v5233_v22  ;;  %4637 = vmatprep.mubr.msk.f32.mxu0 %vm347_vm0, %v294_v63  ;;  %v640_v22 = vld [vmem:[%s5217_s14 + $0x1a] sm:$0xff]  ;;  %v867_v59 = vsel %vm847_vm3, %v837_v51, %v857_v54  ;;  %vm849_vm6 = vcmp.gt.f32.partialorder %v839_v57, 0.0  ;;  %v860_v62 = vmul.f32 0.2, %v840_v58  ;;  %vm850_vm7 = vcmp.gt.f32.partialorder %v840_v58, 0.0 }
  0x2c   : > { %4972 = vmatprep.subr.bf16.mxu0 %v5279_v2  ;;  %v660_v26 = vmul.f32 0.2, %v640_v22  ;;  %vm650_vm9 = vcmp.gt.f32.partialorder %v640_v22, 0.0  ;;  %v868_v61 = vsel %vm848_vm5, %v838_v52, %v858_v56  ;;  %v841_v63 = vld [vmem:[%s5217_s14 + $0x33] sm:$0xff]  ;;  %v869_v1 = vsel %vm849_vm6, %v839_v57, %v859_v60  ;;  %v1124_v20 = vld [vmem:[%s6012_s2] sm:$0xff] }
  0x2d   : > { %v870_v3 = vsel %vm850_vm7, %v840_v58, %v860_v62  ;;  %vm851_vm8 = vcmp.gt.f32.partialorder %v841_v63, 0.0  ;;  %v863_v8 = vmul.f32 0.2, %v843_v5  ;;  %vm853_vm10 = vcmp.gt.f32.partialorder %v843_v5, 0.0  ;;  %v5416_v56 = vld [vmem:[%s6012_s2 + $0x30] sm:$0xff] }
  0x2e   : > { %4638 = vmatmul.mubr.msk.f32.gmra.mrb[2].mxu0 %vm347_vm0, %v295_v4  ;;  %v670_v31 = vsel %vm650_vm9, %v640_v22, %v660_v26  ;;  %v862_v4 = vmul.f32 0.2, %v842_v0  ;;  %vm852_vm9 = vcmp.gt.f32.partialorder %v842_v0, 0.0  ;;  %v865_v13 = vmul.f32 0.2, %v845_v11 }
  0x2f   : > { %4640 = vmatprep.mubr.msk.f32.mxu0 %vm347_vm0, %v296_v6  ;;  %v844_v6 = vld [vmem:[%s5217_s14 + $0x4b] sm:$0xff]  ;;  %vm855_vm12 = vcmp.gt.f32.partialorder %v845_v11, 0.0 }
  0x30   : > { %v872_v9 = vsel %vm852_vm9, %v842_v0, %v862_v4  ;;  %vm854_vm11 = vcmp.gt.f32.partialorder %v844_v6, 0.0  ;;  %v875_v15 = vsel %vm855_vm12, %v845_v11, %v865_v13 }
  0x32   : > { %4641 = vmatmul.mubr.msk.f32.gmra.mrb[4].mxu0 %vm347_vm0, %v297_v10  ;;  %v864_v10 = vmul.f32 0.2, %v844_v6 }
  0x33   : > { %4643 = vmatprep.mubr.msk.f32.mxu0 %vm347_vm0, %v298_v12  ;;  %v873_v12 = vsel %vm853_vm10, %v843_v5, %v863_v8 }
  0x34   : > { %v874_v14 = vsel %vm854_vm11, %v844_v6, %v864_v10 }
  0x36   : > { %4644 = vmatmul.mubr.msk.f32.gmra.mrb[6].mxu0 %vm347_vm0, %v299_v17  ;;  %v4201_v17 = vld [vmem:[%s6012_s2 + $0x40] sm:$0xff] }
  0x37   : > { %4646 = vmatprep.mubr.msk.f32.mxu0 %vm347_vm0, %v300_v19  ;;  %4721 = vmatprep.subr.mxu1 %v4201_v17  ;;  %v4212_v19 = vld [vmem:[%s6012_s2 + $0x50] sm:$0xff] }
  0x38   : > { %4722 = vmatpush3.msra.mxu1 %v4201_v17 }
  0x39   : > { %4738 = vmatprep.subr.mxu1 %v4212_v19 }
  0x3a   : > { %4647 = vmatmul.mubr.msk.f32.gmra.mrb[8].mxu0 %vm347_vm0, %v301_v23 }
  0x3b   : > { %4653 = vmatprep.mubr.msk.f32.mxu0 %vm347_vm0, %v668_v25 }
  0x3e   : > { %4654 = vmatmul.mubr.msk.f32.vlgmr.msra.gmra.mrb[0].mxu0 %vm347_vm0, %v669_v29 }
  0x3f   : > { %4974 = vmatpush3.bf16.msra.mxu0 %v5279_v2  ;;  %4656 = vmatprep.mubr.msk.f32.mxu0 %vm347_vm0, %v670_v31  ;;  %v861_v2 = vmul.f32 0.2, %v841_v63 }
  0x40   : > { %4687 = vmatprep.subr.mxu0 %v4180_v16 }
  0x41   : > { %v871_v7 = vsel %vm851_vm8, %v841_v63, %v861_v2 }
  0x42   : > { %4657 = vmatmul.mubr.msk.f32.gmra.mrb[2].mxu0 %vm347_vm0, %v671_v35 }
  0x43   : > { %4659 = vmatprep.mubr.msk.f32.mxu0 %vm347_vm0, %v672_v37 }
  0x46   : > { %4660 = vmatmul.mubr.msk.f32.gmra.mrb[4].mxu0 %vm347_vm0, %v673_v41 }
  0x47   : > { %4662 = vmatprep.mubr.msk.f32.mxu0 %vm347_vm0, %v674_v43 }
  0x4a   : > { %4663 = vmatmul.mubr.msk.f32.gmra.mrb[6].mxu0 %vm347_vm0, %v675_v47 }
  0x4b   : > { %4665 = vmatprep.mubr.msk.f32.mxu0 %vm347_vm0, %v676_v49 }
  0x4e   : > { %4666 = vmatmul.mubr.msk.f32.gmra.mrb[8].mxu0 %vm347_vm0, %v677_v53 }
  0x4f   : > { %4672 = vmatprep.mubr.msk.f32.mxu0 %vm347_vm0, %v866_v55  ;;  %v5411_v55 = vld [vmem:[%s6012_s2 + $0x18] sm:$0xff] }
  0x52   : > { %4673 = vmatmul.mubr.msk.f32.vlgmr.msra.gmra.mrb[0].mxu0 %vm347_vm0, %v867_v59 }
  0x53   : > { %4675 = vmatprep.mubr.msk.f32.mxu0 %vm347_vm0, %v868_v61  ;;  %4688 = vmatpush3.msra.mxu0 %v4180_v16 }
  0x54   : > { %4704 = vmatprep.subr.mxu0 %v1124_v20 }
  0x56   : > { %4676 = vmatmul.mubr.msk.f32.gmra.mrb[2].mxu0 %vm347_vm0, %v869_v1 }
  0x57   : > { %4678 = vmatprep.mubr.msk.f32.mxu0 %vm347_vm0, %v870_v3 }
  0x5a   : > { %4679 = vmatmul.mubr.msk.f32.gmra.mrb[4].mxu0 %vm347_vm0, %v871_v7 }
  0x5b   : > { %4681 = vmatprep.mubr.msk.f32.mxu0 %vm347_vm0, %v872_v9 }
  0x5e   : > { %4682 = vmatmul.mubr.msk.f32.gmra.mrb[6].mxu0 %vm347_vm0, %v873_v12 }
  0x5f   : > { %4684 = vmatprep.mubr.msk.f32.mxu0 %vm347_vm0, %v874_v14 }
  0x62   : > { %4685 = vmatmul.mubr.msk.f32.gmra.mrb[8].mxu0 %vm347_vm0, %v875_v15  ;;  %v1114_v15 = vld [vmem:[#allocation2] sm:$0xff]  ;;  %vm1771_vm0 = vcmask 31744  }
  0x63   : > { %4689 = vmatprep.mubr.msk.f32.mxu0 %vm246_vm4, %v5358_v18 }
  0x86   : > { %v5368_v21 = vpop.permute.xlu1 %1056  ;;  %v5370_v22 = vpop.permute.xlu0 %1046 }
  0x8a   : > { %v5372_v23 = vpop.permute.xlu1 %1061  ;;  %v5374_v25 = vpop.permute.xlu0 %1051 }
  0x8e   : > { %v5379_v34 = vpop.permute.xlu1 %1071  ;;  %v5382_v36 = vpop.permute.xlu0 %1066 }
  0x92   : > { %v5389_v44 = vpop.permute.xlu1 %1081  ;;  %v5392_v47 = vpop.permute.xlu0 %1076 }
  0x97   : > { %v5442_v4 = vpop.permute.xlu0 %1086 }
  0x98   : > { %v5433_v1 = vpop.permute.xlu1 %1091 }
 0x125   : > { %v4674_v24 = vpop.f32.mrb[0].mxu0 }
 0x126   : > { %v1035_v26 = vmax.f32 %v4674_v24, 0.0  ;;  %v975_v27 = vpop.f32.mrb[1].mxu0 }
 0x127   : > { %v1034_v28 = vmax.f32 %v975_v27, 0.0 }
 0x128   : > { %v1095_v29 = vmul.f32 %v5374_v25, %v1035_v26 }
 0x129   : > { %v1094_v30 = vmul.f32 %v5370_v22, %v1034_v28  ;;  %v4677_v31 = vpop.f32.mrb[2].mxu0  ;;  %v4223_v28 = vld [vmem:[%s6012_s2 + $0x8] sm:$0xff] }
 0x12a   : > { %1105 = vst.msk [vmem:[#allocation2 + $0x13] sm:$0xff] %vm246_vm4, %v1095_v29  ;;  %v1037_v32 = vmax.f32 %v4677_v31, 0.0  ;;  %v985_v33 = vpop.f32.mrb[3].mxu0 }
 0x12b   : > { %1104 = vst.msk [vmem:[#allocation2 + $0xb] sm:$0xff] %vm246_vm4, %v1094_v30  ;;  %v1036_v35 = vmax.f32 %v985_v33, 0.0  ;;  %v4277_v30 = vld [vmem:[%s6012_s2 + $0x20] sm:$0xff] }
 0x12c   : > { %v1097_v37 = vmul.f32 %v5372_v23, %v1037_v32 }
 0x12d   : > { %v1096_v38 = vmul.f32 %v5368_v21, %v1036_v35  ;;  %v4680_v39 = vpop.f32.mrb[4].mxu0 }
 0x12e   : > { %1107 = vst.msk [vmem:[#allocation2 + $0x23] sm:$0xff] %vm246_vm4, %v1097_v37  ;;  %v1039_v40 = vmax.f32 %v4680_v39, 0.0  ;;  %v995_v41 = vpop.f32.mrb[5].mxu0 }
 0x12f   : > { %1106 = vst.msk [vmem:[#allocation2 + $0x1b] sm:$0xff] %vm246_vm4, %v1096_v38  ;;  %v1038_v42 = vmax.f32 %v995_v41, 0.0 }
 0x130   : > { %v1099_v43 = vmul.f32 %v5379_v34, %v1039_v40 }
 0x131   : > { %v1098_v45 = vmul.f32 %v5382_v36, %v1038_v42  ;;  %v4683_v46 = vpop.f32.mrb[6].mxu0  ;;  %v5502_v27 = vld [vmem:[#allocation2 + $0x13] sm:$0xff] }
 0x132   : > { %1109 = vst.msk [vmem:[#allocation2 + $0x33] sm:$0xff] %vm246_vm4, %v1099_v43  ;;  %v1041_v48 = vmax.f32 %v4683_v46, 0.0  ;;  %v1005_v49 = vpop.f32.mrb[7].mxu0  ;;  %v5395_v50 = vld [vmem:[#allocation2 + $0x9] sm:$0xff]  ;;  %v5399_v52 = vld [vmem:[#allocation2 + $0x11] sm:$0xff] }
 0x133   : > { %v5397_v51 = vld [vmem:[#allocation2 + $0xa] sm:$0xff]  ;;  %1108 = vst.msk [vmem:[#allocation2 + $0x2b] sm:$0xff] %vm246_vm4, %v1098_v45  ;;  %v1040_v53 = vmax.f32 %v1005_v49, 0.0  ;;  %4690 = vmatmul.mubr.msk.f32.vlgmr.msra.gmra.mrb[10].mxu0 %vm246_vm4, %v5395_v50  ;;  %v5406_v54 = vld [vmem:[#allocation2 + $0x12] sm:$0xff] }
 0x134   : > { %4723 = vmatprep.mubr.msk.f32.mxu1 %vm246_vm4, %v5397_v51  ;;  %v1101_v57 = vmul.f32 %v5389_v44, %v1041_v48  ;;  %4692 = vmatprep.mubr.msk.f32.mxu0 %vm246_vm4, %v5399_v52  ;;  %v1115_v24 = vld [vmem:[#allocation2 + $0x8] sm:$0xff]  ;;  %v1116_v26 = vld [vmem:[#allocation2 + $0x10] sm:$0xff] }
 0x135   : > { %4724 = vmatmul.mubr.msk.f32.vlgmr.msra.gmra.mrb[0].mxu1 %vm246_vm4, %v5406_v54  ;;  %v1100_v58 = vmul.f32 %v5392_v47, %v1040_v53  ;;  %v4686_v59 = vpop.f32.mrb[8].mxu0  ;;  %4705 = vmatpush3.msra.mxu0 %v1124_v20  ;;  %v5496_v20 = vld [vmem:[#allocation2 + $0xb] sm:$0xff]  ;;  %v5520_v33 = vld [vmem:[#allocation2 + $0x23] sm:$0xff] }
 0x136   : > { %4739 = vmatpush3.msra.mxu1 %v4212_v19  ;;  %1111 = vst.msk [vmem:[#allocation2 + $0x43] sm:$0xff] %vm246_vm4, %v1101_v57  ;;  %v1043_v60 = vmax.f32 %v4686_v59, 0.0  ;;  %v1015_v61 = vpop.f32.mrb[9].mxu0  ;;  %v5425_v62 = vld [vmem:[#allocation2 + $0x19] sm:$0xff]  ;;  %v5429_v0 = vld [vmem:[#allocation2 + $0x21] sm:$0xff]  ;;  %4823 = vmatprep.subr.mxu0 %v5416_v56 }
 0x137   : > { %v5427_v63 = vld [vmem:[#allocation2 + $0x1a] sm:$0xff]  ;;  %4755 = vmatprep.subr.mxu1 %v5411_v55  ;;  %1110 = vst.msk [vmem:[#allocation2 + $0x3b] sm:$0xff] %vm246_vm4, %v1100_v58  ;;  %v1042_v2 = vmax.f32 %v1015_v61, 0.0  ;;  %4693 = vmatmul.mubr.msk.f32.gmra.mrb[12].mxu0 %vm246_vm4, %v5425_v62  ;;  %v5440_v3 = vld [vmem:[#allocation2 + $0x22] sm:$0xff] }
 0x138   : > { %4726 = vmatprep.mubr.msk.f32.mxu1 %vm246_vm4, %v5427_v63  ;;  %v1103_v5 = vmul.f32 %v5433_v1, %v1043_v60  ;;  %4695 = vmatprep.mubr.msk.f32.mxu0 %vm246_vm4, %v5429_v0  ;;  %v5510_v29 = vld [vmem:[#allocation2 + $0x1b] sm:$0xff]  ;;  %v4245_v53 = vld [vmem:[%s6012_s2 + $0x48] sm:$0xff] }
 0x139   : > { %4727 = vmatmul.mubr.msk.f32.gmra.mrb[2].mxu1 %vm246_vm4, %v5440_v3  ;;  %v1102_v6 = vmul.f32 %v5442_v4, %v1042_v2  ;;  %v1117_v31 = vld [vmem:[#allocation2 + $0x18] sm:$0xff]  ;;  %v1118_v32 = vld [vmem:[#allocation2 + $0x20] sm:$0xff]  ;;  %v2325_v2 = vld [vmem:[#allocation2 + $0xc] sm:$0xff] }
 0x13a   : > { %1113 = vst.msk [vmem:[#allocation2 + $0x53] sm:$0xff] %vm246_vm4, %v1103_v5  ;;  %v5451_v7 = vld [vmem:[#allocation2 + $0x29] sm:$0xff]  ;;  %v5455_v9 = vld [vmem:[#allocation2 + $0x31] sm:$0xff] }
 0x13b   : > { %v5453_v8 = vld [vmem:[#allocation2 + $0x2a] sm:$0xff]  ;;  %1112 = vst.msk [vmem:[#allocation2 + $0x4b] sm:$0xff] %vm246_vm4, %v1102_v6  ;;  %4696 = vmatmul.mubr.msk.f32.gmra.mrb[14].mxu0 %vm246_vm4, %v5451_v7  ;;  %v5462_v10 = vld [vmem:[#allocation2 + $0x32] sm:$0xff]  ;;  %v1856_v48 = vld [vmem:[#allocation2 + $0x2] sm:$0xff] }
 0x13c   : > { %4729 = vmatprep.mubr.msk.f32.mxu1 %vm246_vm4, %v5453_v8  ;;  %4698 = vmatprep.mubr.msk.f32.mxu0 %vm246_vm4, %v5455_v9  ;;  %v5525_v35 = vld [vmem:[#allocation2 + $0x2b] sm:$0xff]  ;;  %v5530_v39 = vld [vmem:[#allocation2 + $0x33] sm:$0xff] }
 0x13d   : > { %4730 = vmatmul.mubr.msk.f32.gmra.mrb[4].mxu1 %vm246_vm4, %v5462_v10  ;;  %v1119_v37 = vld [vmem:[#allocation2 + $0x28] sm:$0xff]  ;;  %v1120_v38 = vld [vmem:[#allocation2 + $0x30] sm:$0xff] }
 0x13e   : > { %v5468_v11 = vld [vmem:[#allocation2 + $0x39] sm:$0xff]  ;;  %v5472_v13 = vld [vmem:[#allocation2 + $0x41] sm:$0xff]  ;;  %v5666_v57 = vld [vmem:[#allocation2 + $0x2c] sm:$0xff] }
 0x13f   : > { %v5470_v12 = vld [vmem:[#allocation2 + $0x3a] sm:$0xff]  ;;  %4699 = vmatmul.mubr.msk.f32.gmra.mrb[16].mxu0 %vm246_vm4, %v5468_v11  ;;  %v5478_v14 = vld [vmem:[#allocation2 + $0x42] sm:$0xff] }
 0x140   : > { %4732 = vmatprep.mubr.msk.f32.mxu1 %vm246_vm4, %v5470_v12  ;;  %4701 = vmatprep.mubr.msk.f32.mxu0 %vm246_vm4, %v5472_v13  ;;  %v5535_v40 = vld [vmem:[#allocation2 + $0x3b] sm:$0xff]  ;;  %v5540_v43 = vld [vmem:[#allocation2 + $0x43] sm:$0xff] }
 0x141   : > { %4733 = vmatmul.mubr.msk.f32.gmra.mrb[6].mxu1 %vm246_vm4, %v5478_v14  ;;  %v1121_v41 = vld [vmem:[#allocation2 + $0x38] sm:$0xff]  ;;  %v1122_v42 = vld [vmem:[#allocation2 + $0x40] sm:$0xff]  ;;  %v4331_v6 = vld [vmem:[%s6012_s2 + $0x28] sm:$0xff] }
 0x142   : > { %v5484_v16 = vld [vmem:[#allocation2 + $0x49] sm:$0xff]  ;;  %v5488_v19 = vld [vmem:[#allocation2 + $0x52] sm:$0xff]  ;;  %v2894_v59 = vld [vmem:[#allocation2 + $0x3c] sm:$0xff] }
 0x143   : > { %v5486_v17 = vld [vmem:[#allocation2 + $0x4a] sm:$0xff]  ;;  %4702 = vmatmul.mubr.msk.f32.gmra.mrb[18].mxu0 %vm246_vm4, %v5484_v16  ;;  %v5550_v49 = vld [vmem:[#allocation2 + $0x53] sm:$0xff] }
 0x144   : > { %4735 = vmatprep.mubr.msk.f32.mxu1 %vm246_vm4, %v5486_v17  ;;  %4706 = vmatprep.mubr.msk.f32.mxu0 %vm246_vm4, %v1114_v15  ;;  %v5545_v45 = vld [vmem:[#allocation2 + $0x4b] sm:$0xff]  ;;  %v2893_v58 = vld [vmem:[#allocation2 + $0x34] sm:$0xff] }
 0x145   : > { %4736 = vmatmul.mubr.msk.f32.gmra.mrb[8].mxu1 %vm246_vm4, %v5488_v19  ;;  %v1123_v46 = vld [vmem:[#allocation2 + $0x48] sm:$0xff]  ;;  %v4364_v15 = vld [vmem:[%s6012_s2 + $0x78] sm:$0xff] }
 0x146   : > { %4740 = vmatprep.mubr.msk.f32.mxu1 %vm246_vm4, %v5496_v20  ;;  %v2895_v60 = vld [vmem:[#allocation2 + $0x44] sm:$0xff]  ;;  %v2896_v61 = vld [vmem:[#allocation2 + $0x4c] sm:$0xff] }
 0x147   : > { %4707 = vmatmul.mubr.msk.f32.vlgmr.msra.gmra.mrb[10].mxu0 %vm246_vm4, %v1115_v24  ;;  %v3058_v5 = vld [vmem:[#allocation2 + $0x25] sm:$0xff]  ;;  %v3791_v24 = vld [vmem:[#allocation2 + $0x36] sm:$0xff] }
 0x148   : > { %4709 = vmatprep.mubr.msk.f32.mxu0 %vm246_vm4, %v1116_v26  ;;  %4824 = vmatpush3.msra.mxu0 %v5416_v56  ;;  %v4256_v56 = vld [vmem:[%s6012_s2 + $0x58] sm:$0xff] }
 0x149   : > { %4741 = vmatmul.mubr.msk.f32.vlgmr.msra.gmra.mrb[0].mxu1 %vm246_vm4, %v5502_v27  ;;  %4840 = vmatprep.subr.mxu0 %v4277_v30  ;;  %v3792_v26 = vld [vmem:[#allocation2 + $0x3e] sm:$0xff] }
 0x14a   : > { %4756 = vmatpush3.msra.mxu1 %v5411_v55  ;;  %4743 = vmatprep.mubr.msk.f32.mxu1 %vm246_vm4, %v5510_v29  ;;  %v4299_v55 = vld [vmem:[%s6012_s2 + $0x60] sm:$0xff] }
 0x14b   : > { %4772 = vmatprep.subr.mxu1 %v4223_v28  ;;  %4710 = vmatmul.mubr.msk.f32.gmra.mrb[12].mxu0 %vm246_vm4, %v1117_v31 }
 0x14c   : > { %4712 = vmatprep.mubr.msk.f32.mxu0 %vm246_vm4, %v1118_v32 }
 0x14d   : > { %4744 = vmatmul.mubr.msk.f32.gmra.mrb[2].mxu1 %vm246_vm4, %v5520_v33 }
 0x14e   : > { %4746 = vmatprep.mubr.msk.f32.mxu1 %vm246_vm4, %v5525_v35 }
 0x14f   : > { %4713 = vmatmul.mubr.msk.f32.gmra.mrb[14].mxu0 %vm246_vm4, %v1119_v37 }
 0x150   : > { %4715 = vmatprep.mubr.msk.f32.mxu0 %vm246_vm4, %v1120_v38 }
 0x151   : > { %4747 = vmatmul.mubr.msk.f32.gmra.mrb[4].mxu1 %vm246_vm4, %v5530_v39 }
 0x152   : > { %4749 = vmatprep.mubr.msk.f32.mxu1 %vm246_vm4, %v5535_v40 }
 0x153   : > { %4716 = vmatmul.mubr.msk.f32.gmra.mrb[16].mxu0 %vm246_vm4, %v1121_v41 }
 0x154   : > { %4718 = vmatprep.mubr.msk.f32.mxu0 %vm246_vm4, %v1122_v42 }
 0x155   : > { %4750 = vmatmul.mubr.msk.f32.gmra.mrb[6].mxu1 %vm246_vm4, %v5540_v43 }
 0x156   : > { %4752 = vmatprep.mubr.msk.f32.mxu1 %vm246_vm4, %v5545_v45 }
 0x157   : > { %4719 = vmatmul.mubr.msk.f32.gmra.mrb[18].mxu0 %vm246_vm4, %v1123_v46 }
 0x158   : > { %4825 = vmatprep.mubr.msk.f32.mxu0 %vm246_vm4, %v5496_v20 }
 0x159   : > { %4753 = vmatmul.mubr.msk.f32.gmra.mrb[8].mxu1 %vm246_vm4, %v5550_v49 }
 0x15a   : > { %4757 = vmatprep.mubr.msk.f32.mxu1 %vm246_vm4, %v1856_v48 }
 0x15b   : > { %4826 = vmatmul.mubr.msk.f32.vlgmr.msra.gmra.mrb[20].mxu0 %vm246_vm4, %v5502_v27 }
 0x15c   : > { %4828 = vmatprep.mubr.msk.f32.mxu0 %vm246_vm4, %v5510_v29  ;;  %4841 = vmatpush3.msra.mxu0 %v4277_v30  ;;  %v3796_v30 = vld [vmem:[#allocation2 + $0x5e] sm:$0xff] }
 0x15d   : > { %4758 = vmatmul.mubr.msk.f32.vlgmr.msra.gmra.mrb[10].mxu1 %vm246_vm4, %v5397_v51  ;;  %4857 = vmatprep.subr.mxu0 %v4299_v55 }
 0x15e   : > { %4773 = vmatpush3.msra.mxu1 %v4223_v28  ;;  %4760 = vmatprep.mubr.msk.f32.mxu1 %vm246_vm4, %v5406_v54  ;;  %v3794_v28 = vld [vmem:[#allocation2 + $0x4e] sm:$0xff] }
 0x15f   : > { %4789 = vmatprep.subr.mxu1 %v4245_v53  ;;  %4829 = vmatmul.mubr.msk.f32.gmra.mrb[22].mxu0 %vm246_vm4, %v5520_v33 }
 0x160   : > { %4831 = vmatprep.mubr.msk.f32.mxu0 %vm246_vm4, %v5525_v35 }
 0x161   : > { %4761 = vmatmul.mubr.msk.f32.gmra.mrb[12].mxu1 %vm246_vm4, %v5427_v63 }
 0x162   : > { %4763 = vmatprep.mubr.msk.f32.mxu1 %vm246_vm4, %v5440_v3 }
 0x163   : > { %4832 = vmatmul.mubr.msk.f32.gmra.mrb[24].mxu0 %vm246_vm4, %v5530_v39 }
 0x164   : > { %4834 = vmatprep.mubr.msk.f32.mxu0 %vm246_vm4, %v5535_v40 }
 0x165   : > { %4764 = vmatmul.mubr.msk.f32.gmra.mrb[14].mxu1 %vm246_vm4, %v5453_v8 }
 0x166   : > { %4766 = vmatprep.mubr.msk.f32.mxu1 %vm246_vm4, %v5462_v10 }
 0x167   : > { %4835 = vmatmul.mubr.msk.f32.gmra.mrb[26].mxu0 %vm246_vm4, %v5540_v43 }
 0x168   : > { %4837 = vmatprep.mubr.msk.f32.mxu0 %vm246_vm4, %v5545_v45 }
 0x169   : > { %4767 = vmatmul.mubr.msk.f32.gmra.mrb[16].mxu1 %vm246_vm4, %v5470_v12 }
 0x16a   : > { %4769 = vmatprep.mubr.msk.f32.mxu1 %vm246_vm4, %v5478_v14 }
 0x16b   : > { %4838 = vmatmul.mubr.msk.f32.gmra.mrb[28].mxu0 %vm246_vm4, %v5550_v49 }
 0x16c   : > { %4842 = vmatprep.mubr.msk.f32.mxu0 %vm246_vm4, %v5397_v51  ;;  %v4310_v51 = vld [vmem:[%s6012_s2 + $0x70] sm:$0xff] }
 0x16d   : > { %4770 = vmatmul.mubr.msk.f32.gmra.mrb[18].mxu1 %vm246_vm4, %v5486_v17 }
 0x16e   : > { %4774 = vmatprep.mubr.msk.f32.mxu1 %vm246_vm4, %v5358_v18  ;;  %v5643_v18 = vld [vmem:[#allocation2 + $0x14] sm:$0xff] }
 0x16f   : > { %4843 = vmatmul.mubr.msk.f32.vlgmr.msra.gmra.mrb[20].mxu0 %vm246_vm4, %v5406_v54  ;;  %v4332_v54 = vld [vmem:[%s6012_s2 + $0x38] sm:$0xff] }
 0x170   : > { %4845 = vmatprep.mubr.msk.f32.mxu0 %vm246_vm4, %v5427_v63  ;;  %4858 = vmatpush3.msra.mxu0 %v4299_v55  ;;  %v2898_v63 = vld [vmem:[#allocation2 + $0x5c] sm:$0xff] }
 0x171   : > { %4775 = vmatmul.mubr.msk.f32.vlgmr.msra.gmra.mrb[10].mxu1 %vm246_vm4, %v5395_v50  ;;  %4874 = vmatprep.subr.mxu0 %v4310_v51  ;;  %v5651_v50 = vld [vmem:[#allocation2 + $0x1c] sm:$0xff] }
 0x172   : > { %4790 = vmatpush3.msra.mxu1 %v4245_v53  ;;  %4777 = vmatprep.mubr.msk.f32.mxu1 %vm246_vm4, %v5399_v52  ;;  %v5655_v52 = vld [vmem:[#allocation2 + $0x24] sm:$0xff] }
 0x173   : > { %4806 = vmatprep.subr.mxu1 %v4256_v56  ;;  %4846 = vmatmul.mubr.msk.f32.gmra.mrb[22].mxu0 %vm246_vm4, %v5440_v3  ;;  %v3057_v3 = vld [vmem:[#allocation2 + $0x1d] sm:$0xff] }
 0x174   : > { %4848 = vmatprep.mubr.msk.f32.mxu0 %vm246_vm4, %v5453_v8  ;;  %v3060_v8 = vld [vmem:[#allocation2 + $0x35] sm:$0xff] }
 0x175   : > { %4778 = vmatmul.mubr.msk.f32.gmra.mrb[12].mxu1 %vm246_vm4, %v5425_v62  ;;  %v2897_v62 = vld [vmem:[#allocation2 + $0x54] sm:$0xff] }
 0x176   : > { %4780 = vmatprep.mubr.msk.f32.mxu1 %vm246_vm4, %v5429_v0  ;;  %v3056_v0 = vld [vmem:[#allocation2 + $0x15] sm:$0xff] }
 0x177   : > { %4849 = vmatmul.mubr.msk.f32.gmra.mrb[24].mxu0 %vm246_vm4, %v5462_v10  ;;  %v3062_v10 = vld [vmem:[#allocation2 + $0x45] sm:$0xff] }
 0x178   : > { %4851 = vmatprep.mubr.msk.f32.mxu0 %vm246_vm4, %v5470_v12  ;;  %v3064_v12 = vld [vmem:[#allocation2 + $0x55] sm:$0xff] }
 0x179   : > { %4781 = vmatmul.mubr.msk.f32.gmra.mrb[14].mxu1 %vm246_vm4, %v5451_v7  ;;  %v3059_v7 = vld [vmem:[#allocation2 + $0x2d] sm:$0xff] }
 0x17a   : > { %4783 = vmatprep.mubr.msk.f32.mxu1 %vm246_vm4, %v5455_v9  ;;  %v3061_v9 = vld [vmem:[#allocation2 + $0x3d] sm:$0xff] }
 0x17b   : > { %4852 = vmatmul.mubr.msk.f32.gmra.mrb[26].mxu0 %vm246_vm4, %v5478_v14  ;;  %v4353_v14 = vld [vmem:[%s6012_s2 + $0x68] sm:$0xff] }
 0x17c   : > { %4854 = vmatprep.mubr.msk.f32.mxu0 %vm246_vm4, %v5486_v17  ;;  %v3788_v17 = vld [vmem:[#allocation2 + $0x1e] sm:$0xff] }
 0x17d   : > { %4784 = vmatmul.mubr.msk.f32.gmra.mrb[16].mxu1 %vm246_vm4, %v5468_v11  ;;  %v3063_v11 = vld [vmem:[#allocation2 + $0x4d] sm:$0xff] }
 0x17e   : > { %4786 = vmatprep.mubr.msk.f32.mxu1 %vm246_vm4, %v5472_v13  ;;  %v3065_v13 = vld [vmem:[#allocation2 + $0x5d] sm:$0xff] }
 0x17f   : > { %4855 = vmatmul.mubr.msk.f32.gmra.mrb[28].mxu0 %vm246_vm4, %v5488_v19  ;;  %v3789_v19 = vld [vmem:[#allocation2 + $0x26] sm:$0xff] }
 0x180   : > { %4859 = vmatprep.mubr.msk.f32.mxu0 %vm246_vm4, %v5643_v18 }
 0x181   : > { %4787 = vmatmul.mubr.msk.f32.gmra.mrb[18].mxu1 %vm246_vm4, %v5484_v16  ;;  %v3787_v16 = vld [vmem:[#allocation2 + $0x16] sm:$0xff] }
 0x182   : > { %4791 = vmatprep.mubr.msk.f32.mxu1 %vm246_vm4, %v5496_v20 }
 0x183   : > { %4860 = vmatmul.mubr.msk.f32.vlgmr.msra.gmra.mrb[20].mxu0 %vm246_vm4, %v5651_v50 }
 0x184   : > { %4862 = vmatprep.mubr.msk.f32.mxu0 %vm246_vm4, %v5655_v52  ;;  %4875 = vmatpush3.msra.mxu0 %v4310_v51 }
 0x185   : > { %4792 = vmatmul.mubr.msk.f32.vlgmr.msra.gmra.mrb[10].mxu1 %vm246_vm4, %v5502_v27 }
 0x186   : > { %4807 = vmatpush3.msra.mxu1 %v4256_v56  ;;  %4794 = vmatprep.mubr.msk.f32.mxu1 %vm246_vm4, %v5510_v29 }
 0x187   : > { %4891 = vmatprep.subr.mxu1 %v4332_v54  ;;  %4863 = vmatmul.mubr.msk.f32.gmra.mrb[22].mxu0 %vm246_vm4, %v5666_v57 }
 0x188   : > { %4865 = vmatprep.mubr.msk.f32.mxu0 %vm246_vm4, %v2893_v58 }
 0x189   : > { %4795 = vmatmul.mubr.msk.f32.gmra.mrb[12].mxu1 %vm246_vm4, %v5520_v33 }
 0x18a   : > { %4797 = vmatprep.mubr.msk.f32.mxu1 %vm246_vm4, %v5525_v35 }
 0x18b   : > { %4866 = vmatmul.mubr.msk.f32.gmra.mrb[24].mxu0 %vm246_vm4, %v2894_v59 }
 0x18c   : > { %4868 = vmatprep.mubr.msk.f32.mxu0 %vm246_vm4, %v2895_v60 }
 0x18d   : > { %4798 = vmatmul.mubr.msk.f32.gmra.mrb[14].mxu1 %vm246_vm4, %v5530_v39 }
 0x18e   : > { %4800 = vmatprep.mubr.msk.f32.mxu1 %vm246_vm4, %v5535_v40 }
 0x18f   : > { %4869 = vmatmul.mubr.msk.f32.gmra.mrb[26].mxu0 %vm246_vm4, %v2896_v61 }
 0x190   : > { %4871 = vmatprep.mubr.msk.f32.mxu0 %vm246_vm4, %v2897_v62 }
 0x191   : > { %4801 = vmatmul.mubr.msk.f32.gmra.mrb[16].mxu1 %vm246_vm4, %v5540_v43 }
 0x192   : > { %4803 = vmatprep.mubr.msk.f32.mxu1 %vm246_vm4, %v5545_v45 }
 0x193   : > { %4872 = vmatmul.mubr.msk.f32.gmra.mrb[28].mxu0 %vm246_vm4, %v2898_v63 }
 0x194   : > { %4876 = vmatprep.mubr.msk.f32.mxu0 %vm246_vm4, %v3056_v0 }
 0x195   : > { %4804 = vmatmul.mubr.msk.f32.gmra.mrb[18].mxu1 %vm246_vm4, %v5550_v49 }
 0x196   : > { %4808 = vmatprep.mubr.msk.f32.mxu1 %vm246_vm4, %v2325_v2 }
 0x197   : > { %4877 = vmatmul.mubr.msk.f32.vlgmr.msra.gmra.mrb[20].mxu0 %vm246_vm4, %v3057_v3 }
 0x198   : > { %4879 = vmatprep.mubr.msk.f32.mxu0 %vm246_vm4, %v3058_v5 }
 0x199   : > { %4809 = vmatmul.mubr.msk.f32.vlgmr.msra.gmra.mrb[10].mxu1 %vm246_vm4, %v5643_v18 }
 0x19a   : > { %4892 = vmatpush3.msra.mxu1 %v4332_v54  ;;  %4811 = vmatprep.mubr.msk.f32.mxu1 %vm246_vm4, %v5651_v50 }
 0x19b   : > { %4908 = vmatprep.subr.mxu1 %v4331_v6  ;;  %4880 = vmatmul.mubr.msk.f32.gmra.mrb[22].mxu0 %vm246_vm4, %v3059_v7 }
 0x19c   : > { %4882 = vmatprep.mubr.msk.f32.mxu0 %vm246_vm4, %v3060_v8 }
 0x19d   : > { %4812 = vmatmul.mubr.msk.f32.gmra.mrb[12].mxu1 %vm246_vm4, %v5655_v52 }
 0x19e   : > { %4814 = vmatprep.mubr.msk.f32.mxu1 %vm246_vm4, %v5666_v57 }
 0x19f   : > { %4883 = vmatmul.mubr.msk.f32.gmra.mrb[24].mxu0 %vm246_vm4, %v3061_v9 }
 0x1a0   : > { %4885 = vmatprep.mubr.msk.f32.mxu0 %vm246_vm4, %v3062_v10 }
 0x1a1   : > { %4815 = vmatmul.mubr.msk.f32.gmra.mrb[14].mxu1 %vm246_vm4, %v2893_v58 }
 0x1a2   : > { %4817 = vmatprep.mubr.msk.f32.mxu1 %vm246_vm4, %v2894_v59 }
 0x1a3   : > { %4886 = vmatmul.mubr.msk.f32.gmra.mrb[26].mxu0 %vm246_vm4, %v3063_v11 }
 0x1a4   : > { %4888 = vmatprep.mubr.msk.f32.mxu0 %vm246_vm4, %v3064_v12 }
 0x1a5   : > { %4818 = vmatmul.mubr.msk.f32.gmra.mrb[16].mxu1 %vm246_vm4, %v2895_v60 }
 0x1a6   : > { %4820 = vmatprep.mubr.msk.f32.mxu1 %vm246_vm4, %v2896_v61 }
 0x1a7   : > { %4889 = vmatmul.mubr.msk.f32.gmra.mrb[28].mxu0 %vm246_vm4, %v3065_v13 }
 0x1a9   : > { %4821 = vmatmul.mubr.msk.f32.gmra.mrb[18].mxu1 %vm246_vm4, %v2897_v62 }
 0x1aa   : > { %4893 = vmatprep.mubr.msk.f32.mxu1 %vm246_vm4, %v2325_v2 }
 0x1ad   : > { %4894 = vmatmul.mubr.msk.f32.vlgmr.msra.gmra.mrb[20].mxu1 %vm246_vm4, %v5643_v18 }
 0x1ae   : > { %4909 = vmatpush3.msra.mxu1 %v4331_v6  ;;  %4896 = vmatprep.mubr.msk.f32.mxu1 %vm246_vm4, %v5651_v50 }
 0x1af   : > { %4925 = vmatprep.subr.mxu1 %v4353_v14 }
 0x1b1   : > { %4897 = vmatmul.mubr.msk.f32.gmra.mrb[22].mxu1 %vm246_vm4, %v5655_v52 }
 0x1b2   : > { %4899 = vmatprep.mubr.msk.f32.mxu1 %vm246_vm4, %v5666_v57 }
 0x1b5   : > { %4900 = vmatmul.mubr.msk.f32.gmra.mrb[24].mxu1 %vm246_vm4, %v2893_v58 }
 0x1b6   : > { %4902 = vmatprep.mubr.msk.f32.mxu1 %vm246_vm4, %v2894_v59 }
 0x1b9   : > { %4903 = vmatmul.mubr.msk.f32.gmra.mrb[26].mxu1 %vm246_vm4, %v2895_v60 }
 0x1ba   : > { %4905 = vmatprep.mubr.msk.f32.mxu1 %vm246_vm4, %v2896_v61 }
 0x1bd   : > { %4906 = vmatmul.mubr.msk.f32.gmra.mrb[28].mxu1 %vm246_vm4, %v2897_v62 }
 0x1be   : > { %4910 = vmatprep.mubr.msk.f32.mxu1 %vm246_vm4, %v5496_v20  ;;  %v3790_v20 = vld [vmem:[#allocation2 + $0x2e] sm:$0xff] }
 0x1c1   : > { %4911 = vmatmul.mubr.msk.f32.vlgmr.msra.gmra.mrb[20].mxu1 %vm246_vm4, %v5502_v27  ;;  %v3793_v27 = vld [vmem:[#allocation2 + $0x46] sm:$0xff] }
 0x1c2   : > { %4926 = vmatpush3.msra.mxu1 %v4353_v14  ;;  %4913 = vmatprep.mubr.msk.f32.mxu1 %vm246_vm4, %v5510_v29  ;;  %v3795_v29 = vld [vmem:[#allocation2 + $0x56] sm:$0xff] }
 0x1c3   : > { %4942 = vmatprep.subr.mxu1 %v4364_v15 }
 0x1c5   : > { %4914 = vmatmul.mubr.msk.f32.gmra.mrb[22].mxu1 %vm246_vm4, %v5520_v33 }
 0x1c6   : > { %4916 = vmatprep.mubr.msk.f32.mxu1 %vm246_vm4, %v5525_v35 }
 0x1c9   : > { %4917 = vmatmul.mubr.msk.f32.gmra.mrb[24].mxu1 %vm246_vm4, %v5530_v39 }
 0x1ca   : > { %4919 = vmatprep.mubr.msk.f32.mxu1 %vm246_vm4, %v5535_v40 }
 0x1cd   : > { %4920 = vmatmul.mubr.msk.f32.gmra.mrb[26].mxu1 %vm246_vm4, %v5540_v43 }
 0x1ce   : > { %4922 = vmatprep.mubr.msk.f32.mxu1 %vm246_vm4, %v5545_v45 }
 0x1d1   : > { %4923 = vmatmul.mubr.msk.f32.gmra.mrb[28].mxu1 %vm246_vm4, %v5550_v49 }
 0x1d2   : > { %4927 = vmatprep.mubr.msk.f32.mxu1 %vm246_vm4, %v3056_v0 }
 0x1d5   : > { %4928 = vmatmul.mubr.msk.f32.vlgmr.msra.gmra.mrb[20].mxu1 %vm246_vm4, %v3057_v3 }
 0x1d6   : > { %4943 = vmatpush3.msra.mxu1 %v4364_v15  ;;  %4930 = vmatprep.mubr.msk.f32.mxu1 %vm246_vm4, %v3058_v5 }
 0x1d9   : > { %4931 = vmatmul.mubr.msk.f32.gmra.mrb[22].mxu1 %vm246_vm4, %v3059_v7 }
 0x1da   : > { %4933 = vmatprep.mubr.msk.f32.mxu1 %vm246_vm4, %v3060_v8 }
 0x1dd   : > { %4934 = vmatmul.mubr.msk.f32.gmra.mrb[24].mxu1 %vm246_vm4, %v3061_v9 }
 0x1de   : > { %4936 = vmatprep.mubr.msk.f32.mxu1 %vm246_vm4, %v3062_v10 }
 0x1e1   : > { %4937 = vmatmul.mubr.msk.f32.gmra.mrb[26].mxu1 %vm246_vm4, %v3063_v11 }
 0x1e2   : > { %4939 = vmatprep.mubr.msk.f32.mxu1 %vm246_vm4, %v3064_v12 }
 0x1e5   : > { %4940 = vmatmul.mubr.msk.f32.gmra.mrb[28].mxu1 %vm246_vm4, %v3065_v13 }
 0x1e6   : > { %4944 = vmatprep.mubr.msk.f32.mxu1 %vm246_vm4, %v3787_v16 }
 0x1e9   : > { %4945 = vmatmul.mubr.msk.f32.vlgmr.msra.gmra.mrb[20].mxu1 %vm246_vm4, %v3788_v17 }
 0x1ea   : > { %4947 = vmatprep.mubr.msk.f32.mxu1 %vm246_vm4, %v3789_v19 }
 0x1ed   : > { %4948 = vmatmul.mubr.msk.f32.gmra.mrb[22].mxu1 %vm246_vm4, %v3790_v20 }
 0x1ee   : > { %4950 = vmatprep.mubr.msk.f32.mxu1 %vm246_vm4, %v3791_v24 }
 0x1f1   : > { %4951 = vmatmul.mubr.msk.f32.gmra.mrb[24].mxu1 %vm246_vm4, %v3792_v26 }
 0x1f2   : > { %4953 = vmatprep.mubr.msk.f32.mxu1 %vm246_vm4, %v3793_v27 }
 0x1f5   : > { %4954 = vmatmul.mubr.msk.f32.gmra.mrb[26].mxu1 %vm246_vm4, %v3794_v28 }
 0x1f6   : > { %4956 = vmatprep.mubr.msk.f32.mxu1 %vm246_vm4, %v3795_v29 }
 0x1f9   : > { %4957 = vmatmul.mubr.msk.f32.gmra.mrb[28].mxu1 %vm246_vm4, %v3796_v30  ;;  %vm4037_vm4 = vcmask 24576  }
 0x21a   : > { %v4708_v31 = vpop.f32.mrb[10].mxu0 }
 0x21b   : > { %v1378_v32 = vpop.f32.mrb[11].mxu0 }
 0x21c   : > { %v4742_v33 = vpop.f32.mrb[0].mxu1 }
 0x21d   : > { %v4975_v35 = vadd.f32 %v4742_v33, %v4708_v31  ;;  %v1702_v37 = vpop.f32.mrb[1].mxu1 }
 0x21e   : > { %v4976_v38 = vadd.f32 %v1702_v37, %v1378_v32  ;;  %v4711_v40 = vpop.f32.mrb[12].mxu0 }
 0x21f   : > { %v1762_v39 = vmul.f32 %v4975_v35, %v5374_v25  ;;  %v1388_v42 = vpop.f32.mrb[13].mxu0 }
 0x220   : > { %v1761_v41 = vmul.f32 %v4976_v38, %v5370_v22  ;;  %v4745_v43 = vpop.f32.mrb[2].mxu1 }
 0x221   : > { %1773 = vst.msk [vmem:[%s5781_s26 + $0x8] sm:$0xff] %vm1771_vm0, %v1762_v39  ;;  %v1783_v45 = vsel %vm1771_vm0, %v1762_v39, 0.0  ;;  %v1809_v46 = vmul.f32 %v1762_v39, %v1762_v39  ;;  %v4977_v48 = vadd.f32 %v4745_v43, %v4711_v40  ;;  %v1712_v49 = vpop.f32.mrb[3].mxu1 }
 0x222   : > { %1772 = vst.msk [vmem:[%s5781_s26] sm:$0xff] %vm1771_vm0, %v1761_v41  ;;  %v1782_v53 = vsel %vm1771_vm0, %v1761_v41, 0.0  ;;  %v1808_v55 = vmul.f32 %v1761_v41, %v1761_v41  ;;  %v4978_v56 = vadd.f32 %v1712_v49, %v1388_v42  ;;  %v4714_v52 = vpop.f32.mrb[14].mxu0 }
 0x223   : > { %v1819_v51 = vsel %vm1771_vm0, %v1809_v46, 0.0  ;;  %v1784_v18 = vadd.f32 %v1783_v45, %v1782_v53  ;;  %v1764_v50 = vmul.f32 %v4977_v48, %v5372_v23  ;;  %v1398_v58 = vpop.f32.mrb[15].mxu0 }
 0x224   : > { %v1818_v54 = vsel %vm1771_vm0, %v1808_v55, 0.0  ;;  %v1763_v57 = vmul.f32 %v4978_v56, %v5368_v21  ;;  %v4748_v59 = vpop.f32.mrb[4].mxu1 }
 0x225   : > { %v1820_v60 = vadd.f32 %v1819_v51, %v1818_v54  ;;  %1775 = vst.msk [vmem:[%s5781_s26 + $0x18] sm:$0xff] %vm1771_vm0, %v1764_v50  ;;  %v1811_v61 = vmul.f32 %v1764_v50, %v1764_v50  ;;  %v4979_v62 = vadd.f32 %v4748_v59, %v4714_v52  ;;  %v1722_v63 = vpop.f32.mrb[5].mxu1  ;;  %v1787_v8 = vsel %vm1771_vm0, %v1764_v50, 0.0 }
 0x226   : > { %1774 = vst.msk [vmem:[%s5781_s26 + $0x10] sm:$0xff] %vm1771_vm0, %v1763_v57  ;;  %v1785_v0 = vsel %vm1771_vm0, %v1763_v57, 0.0  ;;  %v1810_v2 = vmul.f32 %v1763_v57, %v1763_v57  ;;  %v4980_v3 = vadd.f32 %v1722_v63, %v1398_v58  ;;  %v4717_v7 = vpop.f32.mrb[16].mxu0 }
 0x227   : > { %v1786_v5 = vadd.f32 %v1785_v0, %v1784_v18  ;;  %v1766_v6 = vmul.f32 %v4979_v62, %v5379_v34  ;;  %v1408_v11 = vpop.f32.mrb[17].mxu0  ;;  %v1823_v13 = vsel %vm1771_vm0, %v1811_v61, 0.0 }
 0x228   : > { %v1821_v9 = vsel %vm1771_vm0, %v1810_v2, 0.0  ;;  %v1765_v10 = vmul.f32 %v4980_v3, %v5382_v36  ;;  %v4751_v12 = vpop.f32.mrb[6].mxu1 }
 0x229   : > { %v1822_v14 = vadd.f32 %v1821_v9, %v1820_v60  ;;  %1777 = vst.msk [vmem:[%s5781_s26 + $0x28] sm:$0xff] %vm1771_vm0, %v1766_v6  ;;  %v1813_v15 = vmul.f32 %v1766_v6, %v1766_v6  ;;  %v1788_v16 = vadd.f32 %v1787_v8, %v1786_v5  ;;  %v1732_v17 = vpop.f32.mrb[7].mxu1  ;;  %v4981_v24 = vadd.f32 %v4751_v12, %v4717_v7 }
 0x22a   : > { %1776 = vst.msk [vmem:[%s5781_s26 + $0x20] sm:$0xff] %vm1771_vm0, %v1765_v10  ;;  %v1789_v19 = vsel %vm1771_vm0, %v1765_v10, 0.0  ;;  %v1812_v20 = vmul.f32 %v1765_v10, %v1765_v10  ;;  %v4982_v26 = vadd.f32 %v1732_v17, %v1408_v11  ;;  %v4720_v29 = vpop.f32.mrb[18].mxu0  ;;  %v1791_v30 = vsel %vm1771_vm0, %v1766_v6, 0.0 }
 0x22b   : > { %v1790_v27 = vadd.f32 %v1789_v19, %v1788_v16  ;;  %v1824_v28 = vadd.f32 %v1823_v13, %v1822_v14  ;;  %v1768_v32 = vmul.f32 %v4981_v24, %v5389_v44  ;;  %v1418_v35 = vpop.f32.mrb[19].mxu0  ;;  %v1827_v42 = vsel %vm1771_vm0, %v1813_v15, 0.0 }
 0x22c   : > { %v1825_v31 = vsel %vm1771_vm0, %v1812_v20, 0.0  ;;  %v1767_v33 = vmul.f32 %v4982_v26, %v5392_v47  ;;  %v4754_v37 = vpop.f32.mrb[8].mxu1 }
 0x22d   : > { %v1826_v38 = vadd.f32 %v1825_v31, %v1824_v28  ;;  %v1792_v39 = vadd.f32 %v1791_v30, %v1790_v27  ;;  %v4983_v40 = vadd.f32 %v4754_v37, %v4720_v29  ;;  %v1742_v41 = vpop.f32.mrb[9].mxu1  ;;  %1779 = vst.msk [vmem:[%s5781_s26 + $0x38] sm:$0xff] %vm1771_vm0, %v1768_v32  ;;  %v1815_v43 = vmul.f32 %v1768_v32, %v1768_v32 }
 0x22e   : > { %1778 = vst.msk [vmem:[%s5781_s26 + $0x30] sm:$0xff] %vm1771_vm0, %v1767_v33  ;;  %v1793_v45 = vsel %vm1771_vm0, %v1767_v33, 0.0  ;;  %v1814_v46 = vmul.f32 %v1767_v33, %v1767_v33  ;;  %v4984_v55 = vadd.f32 %v1742_v41, %v1418_v35  ;;  %v1795_v51 = vsel %vm1771_vm0, %v1768_v32, 0.0 }
 0x22f   : > { %v1794_v48 = vadd.f32 %v1793_v45, %v1792_v39  ;;  %v1828_v49 = vadd.f32 %v1827_v42, %v1826_v38  ;;  %v1770_v53 = vmul.f32 %v4983_v40, %v5433_v1  ;;  %v1831_v52 = vsel %vm1771_vm0, %v1815_v43, 0.0 }
 0x230   : > { %v1829_v56 = vsel %vm1771_vm0, %v1814_v46, 0.0  ;;  %v1769_v50 = vmul.f32 %v4984_v55, %v5442_v4 }
 0x231   : > { %v1830_v18 = vadd.f32 %v1829_v56, %v1828_v49  ;;  %1781 = vst.msk [vmem:[%s5781_s26 + $0x48] sm:$0xff] %vm1771_vm0, %v1770_v53  ;;  %v1796_v54 = vadd.f32 %v1795_v51, %v1794_v48  ;;  %v1817_v57 = vmul.f32 %v1770_v53, %v1770_v53  ;;  %v1799_v62 = vsel %vm1771_vm0, %v1770_v53, 0.0 }
 0x232   : > { %1780 = vst.msk [vmem:[%s5781_s26 + $0x40] sm:$0xff] %vm1771_vm0, %v1769_v50  ;;  %v1797_v58 = vsel %vm1771_vm0, %v1769_v50, 0.0  ;;  %v1816_v59 = vmul.f32 %v1769_v50, %v1769_v50 }
 0x233   : > { %v1832_v60 = vadd.f32 %v1831_v52, %v1830_v18  ;;  %v1798_v61 = vadd.f32 %v1797_v58, %v1796_v54  ;;  %v1835_v3 = vsel %vm1771_vm0, %v1817_v57, 0.0 }
 0x234   : > { %v1833_v63 = vsel %vm1771_vm0, %v1816_v59, 0.0 }
 0x235   : > { %v5832_v0 = vadd.f32 %v1799_v62, %v1798_v61  ;;  %v1834_v2 = vadd.f32 %v1833_v63, %v1832_v60 }
 0x237   : > { %v5835_v5 = vadd.f32 %v1835_v3, %v1834_v2  ;;  %v1801_v43 = vrot.slane %v5832_v0, 4 }
 0x26a   : > { %v4878_v6 = vpop.f32.mrb[20].mxu0 }
 0x26b   : > { %v3224_v7 = vmul.f32 %v4878_v6, %v5374_v25  ;;  %v3164_v9 = vpop.f32.mrb[21].mxu0 }
 0x26c   : > { %v4810_v8 = vpop.f32.mrb[10].mxu1  ;;  %v3223_v11 = vmul.f32 %v3164_v9, %v5370_v22 }
 0x26d   : > { %v2493_v10 = vmul.f32 %v4810_v8, %v5374_v25  ;;  %v2433_v12 = vpop.f32.mrb[11].mxu1  ;;  %4322 = vst.msk [vmem:[%s5781_s26 + $0xa8] sm:$0xff] %vm1771_vm0, %v3224_v7  ;;  %v3245_v13 = vsel %vm1771_vm0, %v3224_v7, 0.0  ;;  %v3271_v14 = vmul.f32 %v3224_v7, %v3224_v7 }
 0x26e   : > { %v2492_v15 = vmul.f32 %v2433_v12, %v5370_v22  ;;  %4321 = vst.msk [vmem:[%s5781_s26 + $0xa0] sm:$0xff] %vm1771_vm0, %v3223_v11  ;;  %v3244_v19 = vsel %vm1771_vm0, %v3223_v11, 0.0  ;;  %v3270_v20 = vmul.f32 %v3223_v11, %v3223_v11  ;;  %v4881_v24 = vpop.f32.mrb[22].mxu0 }
 0x26f   : > { %4268 = vst.msk [vmem:[%s5781_s26 + $0x58] sm:$0xff] %vm1771_vm0, %v2493_v10  ;;  %v2514_v16 = vsel %vm1771_vm0, %v2493_v10, 0.0  ;;  %v2540_v17 = vmul.f32 %v2493_v10, %v2493_v10  ;;  %v3281_v26 = vsel %vm1771_vm0, %v3271_v14, 0.0  ;;  %v3246_v27 = vadd.f32 %v3245_v13, %v3244_v19  ;;  %v3174_v31 = vpop.f32.mrb[23].mxu0 }
 0x270   : > { %4267 = vst.msk [vmem:[%s5781_s26 + $0x50] sm:$0xff] %vm1771_vm0, %v2492_v15  ;;  %v2513_v28 = vsel %vm1771_vm0, %v2492_v15, 0.0  ;;  %v2539_v29 = vmul.f32 %v2492_v15, %v2492_v15  ;;  %v4813_v30 = vpop.f32.mrb[12].mxu1  ;;  %v3280_v33 = vsel %vm1771_vm0, %v3270_v20, 0.0  ;;  %v3226_v37 = vmul.f32 %v4881_v24, %v5372_v23 }
 0x271   : > { %v2550_v32 = vsel %vm1771_vm0, %v2540_v17, 0.0  ;;  %v2515_v35 = vadd.f32 %v2514_v16, %v2513_v28  ;;  %v2443_v38 = vpop.f32.mrb[13].mxu1  ;;  %v3282_v39 = vadd.f32 %v3281_v26, %v3280_v33  ;;  %v2495_v41 = vmul.f32 %v4813_v30, %v5372_v23 }
 0x272   : > { %v2549_v40 = vsel %vm1771_vm0, %v2539_v29, 0.0  ;;  %v3225_v42 = vmul.f32 %v3174_v31, %v5368_v21  ;;  %4324 = vst.msk [vmem:[%s5781_s26 + $0xb8] sm:$0xff] %vm1771_vm0, %v3226_v37  ;;  %v2494_v46 = vmul.f32 %v2443_v38, %v5368_v21  ;;  %v4884_v48 = vpop.f32.mrb[24].mxu0  ;;  %v3249_v49 = vsel %vm1771_vm0, %v3226_v37, 0.0 }
 0x273   : > { %v2551_v45 = vadd.f32 %v2550_v32, %v2549_v40  ;;  %v3273_v53 = vmul.f32 %v3226_v37, %v3226_v37  ;;  %4270 = vst.msk [vmem:[%s5781_s26 + $0x68] sm:$0xff] %vm1771_vm0, %v2495_v41  ;;  %v3184_v18 = vpop.f32.mrb[25].mxu0  ;;  %v2542_v50 = vmul.f32 %v2495_v41, %v2495_v41  ;;  %v2518_v59 = vsel %vm1771_vm0, %v2495_v41, 0.0 }
 0x274   : > { %4323 = vst.msk [vmem:[%s5781_s26 + $0xb0] sm:$0xff] %vm1771_vm0, %v3225_v42  ;;  %v3247_v55 = vsel %vm1771_vm0, %v3225_v42, 0.0  ;;  %v3272_v56 = vmul.f32 %v3225_v42, %v3225_v42  ;;  %v4816_v51 = vpop.f32.mrb[14].mxu1  ;;  %4269 = vst.msk [vmem:[%s5781_s26 + $0x60] sm:$0xff] %vm1771_vm0, %v2494_v46  ;;  %v2516_v54 = vsel %vm1771_vm0, %v2494_v46, 0.0  ;;  %v2541_v57 = vmul.f32 %v2494_v46, %v2494_v46 }
 0x275   : > { %v3248_v52 = vadd.f32 %v3247_v55, %v3246_v27  ;;  %v2453_v58 = vpop.f32.mrb[15].mxu1  ;;  %v2517_v61 = vadd.f32 %v2516_v54, %v2515_v35  ;;  %v3228_v62 = vmul.f32 %v4884_v48, %v5379_v34  ;;  %v2497_v3 = vmul.f32 %v4816_v51, %v5379_v34 }
 0x276   : > { %v3283_v60 = vsel %vm1771_vm0, %v3272_v56, 0.0  ;;  %v2552_v2 = vsel %vm1771_vm0, %v2541_v57, 0.0  ;;  %v3227_v6 = vmul.f32 %v3184_v18, %v5382_v36  ;;  %v4887_v7 = vpop.f32.mrb[26].mxu0  ;;  %v3285_v8 = vsel %vm1771_vm0, %v3273_v53, 0.0 }
 0x277   : > { %v3284_v63 = vadd.f32 %v3283_v60, %v3282_v39  ;;  %v2553_v9 = vadd.f32 %v2552_v2, %v2551_v45  ;;  %4326 = vst.msk [vmem:[%s5781_s26 + $0xc8] sm:$0xff] %vm1771_vm0, %v3228_v62  ;;  %v3275_v10 = vmul.f32 %v3228_v62, %v3228_v62  ;;  %v3250_v11 = vadd.f32 %v3249_v49, %v3248_v52  ;;  %v3194_v13 = vpop.f32.mrb[27].mxu0 }
 0x278   : > { %v4819_v12 = vpop.f32.mrb[16].mxu1  ;;  %v2554_v14 = vsel %vm1771_vm0, %v2542_v50, 0.0  ;;  %v3253_v15 = vsel %vm1771_vm0, %v3228_v62, 0.0  ;;  %4272 = vst.msk [vmem:[%s5781_s26 + $0x78] sm:$0xff] %vm1771_vm0, %v2497_v3  ;;  %4325 = vst.msk [vmem:[%s5781_s26 + $0xc0] sm:$0xff] %vm1771_vm0, %v3227_v6  ;;  %v3251_v16 = vsel %vm1771_vm0, %v3227_v6, 0.0  ;;  %v3274_v17 = vmul.f32 %v3227_v6, %v3227_v6 }
 0x279   : > { %v2463_v19 = vpop.f32.mrb[17].mxu1  ;;  %v2544_v20 = vmul.f32 %v2497_v3, %v2497_v3  ;;  %v3252_v24 = vadd.f32 %v3251_v16, %v3250_v11  ;;  %v3286_v26 = vadd.f32 %v3285_v8, %v3284_v63  ;;  %v2496_v27 = vmul.f32 %v2453_v58, %v5382_v36 }
 0x27a   : > { %v3289_v28 = vsel %vm1771_vm0, %v3275_v10, 0.0  ;;  %v3287_v29 = vsel %vm1771_vm0, %v3274_v17, 0.0  ;;  %v2519_v30 = vadd.f32 %v2518_v59, %v2517_v61  ;;  %v2555_v31 = vadd.f32 %v2554_v14, %v2553_v9  ;;  %v4890_v32 = vpop.f32.mrb[28].mxu0 }
 0x27b   : > { %v3288_v33 = vadd.f32 %v3287_v29, %v3286_v26  ;;  %4271 = vst.msk [vmem:[%s5781_s26 + $0x70] sm:$0xff] %vm1771_vm0, %v2496_v27  ;;  %v2520_v35 = vsel %vm1771_vm0, %v2496_v27, 0.0  ;;  %v2543_v37 = vmul.f32 %v2496_v27, %v2496_v27  ;;  %v3230_v38 = vmul.f32 %v4887_v7, %v5389_v44  ;;  %v3204_v40 = vpop.f32.mrb[29].mxu0 }
 0x27c   : > { %v4822_v39 = vpop.f32.mrb[18].mxu1  ;;  %v2521_v41 = vadd.f32 %v2520_v35, %v2519_v30  ;;  %v2499_v42 = vmul.f32 %v4819_v12, %v5389_v44  ;;  %v3229_v45 = vmul.f32 %v3194_v13, %v5392_v47  ;;  %v3254_v46 = vadd.f32 %v3253_v15, %v3252_v24 }
 0x27d   : > { %v2473_v48 = vpop.f32.mrb[19].mxu1  ;;  %v5901_v49 = vadd.f32 %v1801_v43, %v5832_v0  ;;  %v1837_v53 = vrot.slane %v5835_v5, 4  ;;  %v2556_v55 = vsel %vm1771_vm0, %v2543_v37, 0.0  ;;  %4328 = vst.msk [vmem:[%s5781_s26 + $0xd8] sm:$0xff] %vm1771_vm0, %v3230_v38  ;;  %v3290_v56 = vadd.f32 %v3289_v28, %v3288_v33 }
 0x27e   : > { %v2522_v51 = vsel %vm1771_vm0, %v2497_v3, 0.0  ;;  %v2558_v18 = vsel %vm1771_vm0, %v2544_v20, 0.0  ;;  %v2557_v50 = vadd.f32 %v2556_v55, %v2555_v31  ;;  %4274 = vst.msk [vmem:[%s5781_s26 + $0x88] sm:$0xff] %vm1771_vm0, %v2499_v42  ;;  %4327 = vst.msk [vmem:[%s5781_s26 + $0xd0] sm:$0xff] %vm1771_vm0, %v3229_v45  ;;  %v3255_v0 = vsel %vm1771_vm0, %v3229_v45, 0.0 }
 0x27f   : > { %v3277_v43 = vmul.f32 %v3230_v38, %v3230_v38  ;;  %v3256_v52 = vadd.f32 %v3255_v0, %v3254_v46  ;;  %v3276_v54 = vmul.f32 %v3229_v45, %v3229_v45  ;;  %v2498_v57 = vmul.f32 %v2463_v19, %v5392_v47 }
 0x280   : > { %v2546_v58 = vmul.f32 %v2499_v42, %v2499_v42  ;;  %v2523_v59 = vadd.f32 %v2522_v51, %v2521_v41  ;;  %v2559_v60 = vadd.f32 %v2558_v18, %v2557_v50  ;;  %v3232_v61 = vmul.f32 %v4890_v32, %v5433_v1 }
 0x281   : > { %v3291_v62 = vsel %vm1771_vm0, %v3276_v54, 0.0  ;;  %4273 = vst.msk [vmem:[%s5781_s26 + $0x80] sm:$0xff] %vm1771_vm0, %v2498_v57  ;;  %v2524_v63 = vsel %vm1771_vm0, %v2498_v57, 0.0  ;;  %v2545_v2 = vmul.f32 %v2498_v57, %v2498_v57  ;;  %v2501_v3 = vmul.f32 %v4822_v39, %v5433_v1 }
 0x282   : > { %v1838_v6 = vadd.f32 %v1837_v53, %v5835_v5  ;;  %v3257_v7 = vsel %vm1771_vm0, %v3230_v38, 0.0  ;;  %v3292_v8 = vadd.f32 %v3291_v62, %v3290_v56  ;;  %v2525_v9 = vadd.f32 %v2524_v63, %v2523_v59  ;;  %4330 = vst.msk [vmem:[%s5781_s26 + $0xe8] sm:$0xff] %vm1771_vm0, %v3232_v61 }
 0x283   : > { %v3293_v10 = vsel %vm1771_vm0, %v3277_v43, 0.0  ;;  %v2526_v11 = vsel %vm1771_vm0, %v2499_v42, 0.0  ;;  %v2560_v12 = vsel %vm1771_vm0, %v2545_v2, 0.0  ;;  %4276 = vst.msk [vmem:[%s5781_s26 + $0x98] sm:$0xff] %vm1771_vm0, %v2501_v3  ;;  %v3231_v13 = vmul.f32 %v3204_v40, %v5442_v4 }
 0x284   : > { %v2562_v14 = vsel %vm1771_vm0, %v2546_v58, 0.0  ;;  %v2561_v5 = vadd.f32 %v2560_v12, %v2559_v60  ;;  %v3258_v15 = vadd.f32 %v3257_v7, %v3256_v52  ;;  %v3294_v16 = vadd.f32 %v3293_v10, %v3292_v8 }
 0x285   : > { %v3279_v17 = vmul.f32 %v3232_v61, %v3232_v61  ;;  %4329 = vst.msk [vmem:[%s5781_s26 + $0xe0] sm:$0xff] %vm1771_vm0, %v3231_v13  ;;  %v3259_v19 = vsel %vm1771_vm0, %v3231_v13, 0.0  ;;  %v3278_v20 = vmul.f32 %v3231_v13, %v3231_v13  ;;  %v2500_v24 = vmul.f32 %v2473_v48, %v5442_v4 }
 0x286   : > { %v3261_v26 = vsel %vm1771_vm0, %v3232_v61, 0.0  ;;  %v3260_v27 = vadd.f32 %v3259_v19, %v3258_v15  ;;  %v2527_v28 = vadd.f32 %v2526_v11, %v2525_v9  ;;  %v2563_v29 = vadd.f32 %v2562_v14, %v2561_v5 }
 0x287   : > { %v2548_v30 = vmul.f32 %v2501_v3, %v2501_v3  ;;  %v3295_v31 = vsel %vm1771_vm0, %v3278_v20, 0.0  ;;  %4275 = vst.msk [vmem:[%s5781_s26 + $0x90] sm:$0xff] %vm1771_vm0, %v2500_v24  ;;  %v2528_v32 = vsel %vm1771_vm0, %v2500_v24, 0.0  ;;  %v2547_v33 = vmul.f32 %v2500_v24, %v2500_v24 }
 0x288   : > { %v3262_v35 = vadd.f32 %v3261_v26, %v3260_v27  ;;  %v3296_v37 = vadd.f32 %v3295_v31, %v3294_v16  ;;  %v2529_v38 = vadd.f32 %v2528_v32, %v2527_v28  ;;  %v1803_v39 = vrot.slane %v5901_v49, 2 }
 0x289   : > { %v3297_v40 = vsel %vm1771_vm0, %v3279_v17, 0.0  ;;  %v2530_v41 = vsel %vm1771_vm0, %v2501_v3, 0.0  ;;  %v2564_v42 = vsel %vm1771_vm0, %v2547_v33, 0.0  ;;  %v1839_v55 = vrot.slane %v1838_v6, 2 }
 0x28a   : > { %v3263_v45 = vrot.slane %v3262_v35, 4  ;;  %v3298_v46 = vadd.f32 %v3297_v40, %v3296_v37  ;;  %v2531_v48 = vadd.f32 %v2530_v41, %v2529_v38  ;;  %v2565_v53 = vadd.f32 %v2564_v42, %v2563_v29 }
 0x28b   : > { %v2566_v56 = vsel %vm1771_vm0, %v2548_v30, 0.0  ;;  %v1804_v43 = vadd.f32 %v1803_v39, %v5901_v49  ;;  %v1840_v59 = vadd.f32 %v1839_v55, %v1838_v6 }
 0x28c   : > { %v3264_v51 = vadd.f32 %v3263_v45, %v3262_v35  ;;  %v3299_v18 = vrot.slane %v3298_v46, 4  ;;  %v2532_v50 = vrot.slane %v2531_v48, 4  ;;  %v2567_v0 = vadd.f32 %v2566_v56, %v2565_v53 }
 0x28d   : > { %v1805_v2 = vrot.slane %v1804_v43, 1  ;;  %v1841_v9 = vrot.slane %v1840_v59, 1 }
 0x28e   : > { %v3265_v52 = vrot.slane %v3264_v51, 2  ;;  %v3300_v54 = vadd.f32 %v3299_v18, %v3298_v46  ;;  %v2533_v57 = vadd.f32 %v2532_v50, %v2531_v48  ;;  %v2568_v58 = vrot.slane %v2567_v0, 4 }
 0x28f   : > { %v1806_v13 = vadd.f32 %v1805_v2, %v1804_v43  ;;  %v1842_v15 = vadd.f32 %v1841_v9, %v1840_v59 }
 0x290   : > { %v3266_v60 = vadd.f32 %v3265_v52, %v3264_v51  ;;  %v3301_v61 = vrot.slane %v3300_v54, 2  ;;  %v2534_v62 = vrot.slane %v2533_v57, 2  ;;  %v2569_v63 = vadd.f32 %v2568_v58, %v2567_v0 }
 0x292   : > { %v3302_v3 = vadd.f32 %v3301_v61, %v3300_v54  ;;  %v2535_v7 = vadd.f32 %v2534_v62, %v2533_v57  ;;  %v2570_v8 = vrot.slane %v2569_v63, 2  ;;  %v3267_v10 = vrot.slane %v3266_v60, 1 }
 0x294   : > { %v2536_v11 = vrot.slane %v2535_v7, 1  ;;  %v2571_v12 = vadd.f32 %v2570_v8, %v2569_v63  ;;  %v3303_v49 = vrot.slane %v3302_v3, 1  ;;  %v3268_v6 = vadd.f32 %v3267_v10, %v3266_v60 }
 0x296   : > { %v2537_v14 = vadd.f32 %v2536_v11, %v2535_v7  ;;  %v2572_v5 = vrot.slane %v2571_v12, 1  ;;  %v3304_v19 = vadd.f32 %v3303_v49, %v3302_v3 }
 0x298   : > { %v2538_v16 = vadd.f32 %v2537_v14, %v1806_v13  ;;  %v2573_v17 = vadd.f32 %v2572_v5, %v2571_v12 }
 0x29a   : > { %v2574_v20 = vadd.f32 %v2573_v17, %v1842_v15  ;;  %v5947_v24 = vadd.f32 %v3268_v6, %v2538_v16 }
 0x29c   : > { %v5949_v26 = vadd.f32 %v3304_v19, %v2574_v20 }
 0x2bc   : > { %v4946_v27 = vpop.f32.mrb[20].mxu1 }
 0x2bd   : > { %v3955_v28 = vmul.f32 %v4946_v27, %v5374_v25  ;;  %v3895_v29 = vpop.f32.mrb[21].mxu1 }
 0x2be   : > { %v3954_v30 = vmul.f32 %v3895_v29, %v5370_v22 }
 0x2bf   : > { %4376 = vst.msk [vmem:[%s5781_s26 + $0xf8] sm:$0xff] %vm1771_vm0, %v3955_v28  ;;  %v3976_v31 = vsel %vm1771_vm0, %v3955_v28, 0.0  ;;  %v4002_v32 = vmul.f32 %v3955_v28, %v3955_v28 }
 0x2c0   : > { %4375 = vst.msk [vmem:[%s5781_s26 + $0xf0] sm:$0xff] %vm1771_vm0, %v3954_v30  ;;  %v3975_v33 = vsel %vm1771_vm0, %v3954_v30, 0.0  ;;  %v4001_v35 = vmul.f32 %v3954_v30, %v3954_v30  ;;  %v4949_v37 = vpop.f32.mrb[22].mxu1 }
 0x2c1   : > { %v4012_v38 = vsel %vm1771_vm0, %v4002_v32, 0.0  ;;  %v3977_v39 = vadd.f32 %v3976_v31, %v3975_v33  ;;  %v3957_v25 = vmul.f32 %v4949_v37, %v5372_v23  ;;  %v3905_v40 = vpop.f32.mrb[23].mxu1 }
 0x2c2   : > { %v4011_v22 = vsel %vm1771_vm0, %v4001_v35, 0.0  ;;  %v3956_v41 = vmul.f32 %v3905_v40, %v5368_v21 }
 0x2c3   : > { %v4013_v42 = vadd.f32 %v4012_v38, %v4011_v22  ;;  %4378 = vst.msk [vmem:[%s5781_s26 + $0x108] sm:$0xff] %vm1771_vm0, %v3957_v25  ;;  %v4004_v45 = vmul.f32 %v3957_v25, %v3957_v25  ;;  %v3980_v51 = vsel %vm1771_vm0, %v3957_v25, 0.0 }
 0x2c4   : > { %4377 = vst.msk [vmem:[%s5781_s26 + $0x100] sm:$0xff] %vm1771_vm0, %v3956_v41  ;;  %v3978_v46 = vsel %vm1771_vm0, %v3956_v41, 0.0  ;;  %v4003_v48 = vmul.f32 %v3956_v41, %v3956_v41  ;;  %v4952_v53 = vpop.f32.mrb[24].mxu1 }
 0x2c5   : > { %v3979_v55 = vadd.f32 %v3978_v46, %v3977_v39  ;;  %v3959_v23 = vmul.f32 %v4952_v53, %v5379_v34  ;;  %v3915_v56 = vpop.f32.mrb[25].mxu1  ;;  %v4016_v43 = vsel %vm1771_vm0, %v4004_v45, 0.0 }
 0x2c6   : > { %v4014_v18 = vsel %vm1771_vm0, %v4003_v48, 0.0  ;;  %v3958_v21 = vmul.f32 %v3915_v56, %v5382_v36 }
 0x2c7   : > { %v4015_v50 = vadd.f32 %v4014_v18, %v4013_v42  ;;  %4380 = vst.msk [vmem:[%s5781_s26 + $0x118] sm:$0xff] %vm1771_vm0, %v3959_v23  ;;  %v3981_v0 = vadd.f32 %v3980_v51, %v3979_v55  ;;  %v4006_v52 = vmul.f32 %v3959_v23, %v3959_v23  ;;  %v3984_v61 = vsel %vm1771_vm0, %v3959_v23, 0.0 }
 0x2c8   : > { %4379 = vst.msk [vmem:[%s5781_s26 + $0x110] sm:$0xff] %vm1771_vm0, %v3958_v21  ;;  %v3982_v34 = vsel %vm1771_vm0, %v3958_v21, 0.0  ;;  %v4005_v54 = vmul.f32 %v3958_v21, %v3958_v21  ;;  %v4955_v57 = vpop.f32.mrb[26].mxu1 }
 0x2c9   : > { %v3983_v58 = vadd.f32 %v3982_v34, %v3981_v0  ;;  %v4017_v59 = vadd.f32 %v4016_v43, %v4015_v50  ;;  %v3961_v60 = vmul.f32 %v4955_v57, %v5389_v44  ;;  %v3925_v36 = vpop.f32.mrb[27].mxu1  ;;  %v4020_v7 = vsel %vm1771_vm0, %v4006_v52, 0.0 }
 0x2ca   : > { %v4018_v62 = vsel %vm1771_vm0, %v4005_v54, 0.0  ;;  %v3960_v63 = vmul.f32 %v3925_v36, %v5392_v47 }
 0x2cb   : > { %v4019_v2 = vadd.f32 %v4018_v62, %v4017_v59  ;;  %4382 = vst.msk [vmem:[%s5781_s26 + $0x128] sm:$0xff] %vm1771_vm0, %v3961_v60  ;;  %v3985_v3 = vadd.f32 %v3984_v61, %v3983_v58  ;;  %v4008_v8 = vmul.f32 %v3961_v60, %v3961_v60  ;;  %v3988_v49 = vsel %vm1771_vm0, %v3961_v60, 0.0 }
 0x2cc   : > { %4381 = vst.msk [vmem:[%s5781_s26 + $0x120] sm:$0xff] %vm1771_vm0, %v3960_v63  ;;  %v3986_v44 = vsel %vm1771_vm0, %v3960_v63, 0.0  ;;  %v4007_v9 = vmul.f32 %v3960_v63, %v3960_v63  ;;  %v4958_v10 = vpop.f32.mrb[28].mxu1 }
 0x2cd   : > { %v3987_v11 = vadd.f32 %v3986_v44, %v3985_v3  ;;  %v4021_v12 = vadd.f32 %v4020_v7, %v4019_v2  ;;  %v3963_v13 = vmul.f32 %v4958_v10, %v5433_v1  ;;  %v3935_v47 = vpop.f32.mrb[29].mxu1  ;;  %v4024_v16 = vsel %vm1771_vm0, %v4008_v8, 0.0 }
 0x2ce   : > { %v4022_v14 = vsel %vm1771_vm0, %v4007_v9, 0.0  ;;  %v3962_v5 = vmul.f32 %v3935_v47, %v5442_v4 }
 0x2cf   : > { %v4023_v15 = vadd.f32 %v4022_v14, %v4021_v12  ;;  %4384 = vst.msk [vmem:[%s5781_s26 + $0x138] sm:$0xff] %vm1771_vm0, %v3963_v13  ;;  %v3989_v6 = vadd.f32 %v3988_v49, %v3987_v11  ;;  %v4010_v17 = vmul.f32 %v3963_v13, %v3963_v13  ;;  %v3992_v28 = vsel %vm1771_vm0, %v3963_v13, 0.0 }
 0x2d0   : > { %4383 = vst.msk [vmem:[%s5781_s26 + $0x130] sm:$0xff] %vm1771_vm0, %v3962_v5  ;;  %v3990_v19 = vsel %vm1771_vm0, %v3962_v5, 0.0  ;;  %v4009_v20 = vmul.f32 %v3962_v5, %v3962_v5 }
 0x2d1   : > { %v3991_v1 = vadd.f32 %v3990_v19, %v3989_v6  ;;  %v4025_v27 = vadd.f32 %v4024_v16, %v4023_v15  ;;  %v4028_v31 = vsel %vm1771_vm0, %v4010_v17, 0.0 }
 0x2d2   : > { %v4026_v29 = vsel %vm1771_vm0, %v4009_v20, 0.0 }
 0x2d3   : > { %v3993_v4 = vadd.f32 %v3992_v28, %v3991_v1  ;;  %v4027_v30 = vadd.f32 %v4026_v29, %v4025_v27 }
 0x2d5   : > { %v3994_v32 = vrot.slane %v3993_v4, 4  ;;  %v4029_v33 = vadd.f32 %v4028_v31, %v4027_v30 }
 0x2d7   : > { %v3995_v35 = vadd.f32 %v3994_v32, %v3993_v4  ;;  %v4030_v37 = vrot.slane %v4029_v33, 4 }
 0x2d9   : > { %v3996_v38 = vrot.slane %v3995_v35, 2  ;;  %v4031_v39 = vadd.f32 %v4030_v37, %v4029_v33 }
 0x2db   : > { %v3997_v25 = vadd.f32 %v3996_v38, %v3995_v35  ;;  %v4032_v40 = vrot.slane %v4031_v39, 2 }
 0x2dd   : > { %v3998_v22 = vrot.slane %v3997_v25, 1  ;;  %v4033_v41 = vadd.f32 %v4032_v40, %v4031_v39 }
 0x2df   : > { %v3999_v42 = vadd.f32 %v3998_v22, %v3997_v25  ;;  %v4034_v45 = vrot.slane %v4033_v41, 1 }
 0x2e1   : > { %v4000_v46 = vadd.f32 %v3999_v42, %v5947_v24  ;;  %v4035_v48 = vadd.f32 %v4034_v45, %v4033_v41 }
 0x2e3   : > { %v4036_v53 = vadd.f32 %v4035_v48, %v5949_v26  ;;  %4038 = vst.msk [vmem:[%s235_s30] sm:$0x1] %vm4037_vm4, %v4000_v46 }
 0x2e5   : > { %4039 = vst.msk [vmem:[%s235_s30 + $0x1] sm:$0x1] %vm4037_vm4, %v4036_v53 }
 0x2e6 PF: > { %s16_s18 = sadd.s32 1, %s5145_s18  }
 0x2e7   : > { %p13_p4 = scmp.ge.s32.totalorder %s16_s18, 4  }
 0x2e9   :  { %15 = sbr.rel (!%p13_p4) target bundleno = 1 (0x1), region = 99 }

</bundles_post_ra>
